<compile_context>
chip_gen: v7x
topology: tpu7x:2x2x1
jax: 0.10.0
libtpu: 0.0.40
codegen_flags: <defaults>
</compile_context>

<pallas_src>
import numpy as np

import jax
import jax.numpy as jnp
from jax import lax
from jax.experimental import pallas as pl
from jax.experimental.pallas import tpu as pltpu


# ----------------------------------------------------------------------------
# Fused Pallas kernel (one image per program)
# ----------------------------------------------------------------------------
def _make_memblock_kernel(H, WC, num_resblock, num_memblock):
    R, NM = num_resblock, num_memblock

    def kernel(*refs):
        x_ref = refs[0]
        ltm_refs = refs[1:1 + NM]
        (s1_ref, b1_ref, w1_ref,
         s2_ref, b2_ref, w2_ref,
         gs_ref, gb_ref, gw_ref,
         o_ref) = refs[1 + NM:]

        zrow = jnp.zeros((1, WC), jnp.float32)

        def bn_relu(v, scale, bias):
            # scale/bias are (1, WC), channel-interleaved; broadcast over rows.
            return jnp.maximum(v * scale + bias, 0.0)

        def conv3x3(y, w_ref, r):
            """3x3 conv, stride 1, zero-pad 1, no bias.  y: (H, WC) f32.

            kx taps + channel mixing live in the banded (WC, WC) weights
            (built once at init); ky taps are zero-filled row shifts, which
            also implement the vertical zero padding.  Three accumulated
            bf16 MXU matmuls -- no im2col, no relayout copies."""
            y_up = jnp.concatenate([zrow, y[:-1, :]], axis=0)   # row r -> y[r-1]
            y_dn = jnp.concatenate([y[1:, :], zrow], axis=0)    # row r -> y[r+1]
            acc = jnp.dot(y_up.astype(w_ref.dtype), w_ref[r, 0],
                          preferred_element_type=jnp.float32)
            acc += jnp.dot(y.astype(w_ref.dtype), w_ref[r, 1],
                           preferred_element_type=jnp.float32)
            acc += jnp.dot(y_dn.astype(w_ref.dtype), w_ref[r, 2],
                           preferred_element_type=jnp.float32)
            return acc

        def gate_accum(acc, src, s):
            # Fused gate: per-segment BN+ReLU, then block-diagonal 1x1-conv
            # matmul accumulated into the gate output.  No (M, S*C) concat.
            yg = bn_relu(src, gs_ref[s], gb_ref[s])
            return acc + jnp.dot(yg.astype(gw_ref.dtype), gw_ref[s],
                                 preferred_element_type=jnp.float32)

        gate_acc = jnp.zeros((H, WC), jnp.float32)

        # Long-term memories first (matches torch.cat(long_term + short_term)).
        for m in range(NM):
            gate_acc = gate_accum(gate_acc, ltm_refs[m][0].astype(jnp.float32), m)

        # Recursive (residual) unit -- everything stays in vregs/VMEM.
        x = x_ref[0].astype(jnp.float32)                        # (H, WC)
        for r in range(R):
            residual = x
            y = bn_relu(x, s1_ref[r], b1_ref[r])
            out = conv3x3(y, w1_ref, r)
            y = bn_relu(out, s2_ref[r], b2_ref[r])
            out = conv3x3(y, w2_ref, r)
            x = out + residual
            gate_acc = gate_accum(gate_acc, x, NM + r)          # short-term memory

        o_ref[0] = gate_acc.astype(o_ref.dtype)

    return kernel


# ----------------------------------------------------------------------------
# Wrapper
# ----------------------------------------------------------------------------
def memory_block_forward(packed, x, long_term_mem):
    """Fused MemoryBlock forward (NHWC inputs). Appends gate_out to
    long_term_mem (matching the PyTorch module's side effect) and returns it."""
    B, H, W, C = x.shape
    NM = len(long_term_mem)
    R = packed["w1"].shape[0]
    S = packed["gw"].shape[0]
    WC = W * C
    assert packed["w1"].shape[-1] == WC and S == NM + R

    # Free layout plumbing: NHWC (B, H, W, C) -> (B, H, W*C) (same bytes).
    x2 = x.reshape(B, H, WC)
    ltm2 = [m.reshape(B, H, WC) for m in long_term_mem]

    kernel = _make_memblock_kernel(H, WC, R, NM)

    img_spec = pl.BlockSpec((1, H, WC), lambda i: (i, 0, 0))

    def full_spec(shape):
        n = len(shape)
        return pl.BlockSpec(shape, lambda i, _n=n: (0,) * _n)

    in_specs = ([img_spec] * (1 + NM) + [
        full_spec((R, 1, WC)), full_spec((R, 1, WC)), full_spec((R, 3, WC, WC)),
        full_spec((R, 1, WC)), full_spec((R, 1, WC)), full_spec((R, 3, WC, WC)),
        full_spec((S, 1, WC)), full_spec((S, 1, WC)), full_spec((S, WC, WC)),
    ])

    out = pl.pallas_call(
        kernel,
        out_shape=jax.ShapeDtypeStruct((B, H, WC), jnp.float32),
        grid=(B,),
        in_specs=in_specs,
        out_specs=pl.BlockSpec((1, H, WC), lambda i: (i, 0, 0)),
        compiler_params=pltpu.CompilerParams(
            dimension_semantics=("parallel",),
            vmem_limit_bytes=32 * 1024 * 1024),
    )(x2, *ltm2,
      packed["s1"], packed["b1"], packed["w1"],
      packed["s2"], packed["b2"], packed["w2"],
      packed["gs"], packed["gb"], packed["gw"])

    gate_out = out.reshape(B, H, W, C)                          # free reshape back
    long_term_mem.append(gate_out)                              # module side effect
    return gate_out


# ----------------------------------------------------------------------------
# Parameter init (raw, reference layout) + packing into kernel layout
# ----------------------------------------------------------------------------
def _bn_scale_bias(key, c):
    k1, k2, k3, k4 = jax.random.split(key, 4)
    gamma = 1.0 + 0.1 * jax.random.normal(k1, (c,), jnp.float32)
    beta = 0.1 * jax.random.normal(k2, (c,), jnp.float32)
    running_mean = 0.1 * jax.random.normal(k3, (c,), jnp.float32)
    running_var = 1.0 + 0.1 * jnp.abs(jax.random.normal(k4, (c,), jnp.float32))
    scale = gamma / jnp.sqrt(running_var + 1e-5)
    bias = beta - running_mean * scale
    return scale, bias


def init_params(key, channels, num_resblock, num_memblock):
    """Raw params: HWIO 3x3 conv weights, folded-BN scale/bias, gate (S*C, C)."""
    C, R, NM = channels, num_resblock, num_memblock
    S = R + NM
    s1, b1, w1, s2, b2, w2 = [], [], [], [], [], []
    for _ in range(R):
        key, k1, k2, k3, k4 = jax.random.split(key, 5)
        sc1, bs1 = _bn_scale_bias(k1, C)
        sc2, bs2 = _bn_scale_bias(k2, C)
        s1.append(sc1); b1.append(bs1); s2.append(sc2); b2.append(bs2)
        w1.append(jax.random.normal(k3, (3, 3, C, C), jnp.float32)
                  * jnp.sqrt(2.0 / (9 * C)))
        w2.append(jax.random.normal(k4, (3, 3, C, C), jnp.float32)
                  * jnp.sqrt(2.0 / (9 * C)))
    key, kg1, kg2 = jax.random.split(key, 3)
    gs, gb = _bn_scale_bias(kg1, S * C)
    gw = jax.random.normal(kg2, (S * C, C), jnp.float32) * jnp.sqrt(2.0 / (S * C))
    return {
        "rb_s1": jnp.stack(s1), "rb_b1": jnp.stack(b1), "rb_w1": jnp.stack(w1),
        "rb_s2": jnp.stack(s2), "rb_b2": jnp.stack(b2), "rb_w2": jnp.stack(w2),
        "gate_s": gs, "gate_b": gb, "gate_w": gw,
    }


def pack_params(params, W, weight_dtype=jnp.bfloat16):
    """Init-time repack into the kernel's channel-interleaved matmul layout."""
    R, _, _, C, _ = params["rb_w1"].shape
    SC = params["gate_w"].shape[0]
    S = SC // C
    WC = W * C

    def band(w_hwio):
        # (3, 3, C, C) HWIO -> (3, WC, WC): per-ky banded matrix folding the
        # kx taps, Cin->Cout mixing and the horizontal zero padding.
        w = np.asarray(w_hwio, np.float32)
        m = np.zeros((3, WC, WC), np.float32)
        for ky in range(3):
            for kx in range(3):
                dx = kx - 1
                for xo in range(W):
                    xi = xo + dx
                    if 0 <= xi < W:
                        m[ky, xi * C:(xi + 1) * C, xo * C:(xo + 1) * C] = w[ky, kx]
        return m

    def tile_rows(v2d):  # (n, C) -> (n, 1, WC), channel pattern repeated W times
        v = np.asarray(v2d, np.float32)
        return np.tile(v, (1, W))[:, None, :]

    gw = np.asarray(params["gate_w"], np.float32)               # (S*C, C)
    eye_w = np.eye(W, dtype=np.float32)
    gate_w = np.stack([np.kron(eye_w, gw[s * C:(s + 1) * C, :]) for s in range(S)])
    gate_s = np.asarray(params["gate_s"], np.float32).reshape(S, C)
    gate_b = np.asarray(params["gate_b"], np.float32).reshape(S, C)

    return {
        "s1": jnp.asarray(tile_rows(params["rb_s1"])),                        # (R,1,WC) f32
        "b1": jnp.asarray(tile_rows(params["rb_b1"])),
        "w1": jnp.asarray(np.stack([band(params["rb_w1"][r]) for r in range(R)]),
                          weight_dtype),                                      # (R,3,WC,WC)
        "s2": jnp.asarray(tile_rows(params["rb_s2"])),
        "b2": jnp.asarray(tile_rows(params["rb_b2"])),
        "w2": jnp.asarray(np.stack([band(params["rb_w2"][r]) for r in range(R)]),
                          weight_dtype),
        "gs": jnp.asarray(tile_rows(gate_s)),                                 # (S,1,WC)
        "gb": jnp.asarray(tile_rows(gate_b)),
        "gw": jnp.asarray(gate_w, weight_dtype),                              # (S,WC,WC)
    }


# ----------------------------------------------------------------------------
# Pure-JAX reference (for correctness check)
# ----------------------------------------------------------------------------
def memory_block_ref(params, x, long_term_mem):
    R = params["rb_w1"].shape[0]

    def bn_relu(v, s, b):
        return jnp.maximum(v * s.reshape(1, 1, 1, -1) + b.reshape(1, 1, 1, -1), 0.0)

    def conv(v, w, pad):
        return lax.conv_general_dilated(
            v, w, window_strides=(1, 1), padding=[(pad, pad), (pad, pad)],
            dimension_numbers=("NHWC", "HWIO", "NHWC"))

    short = []
    cur = x
    for r in range(R):
        res = cur
        y = bn_relu(cur, params["rb_s1"][r], params["rb_b1"][r])
        out = conv(y, params["rb_w1"][r], 1)
        y = bn_relu(out, params["rb_s2"][r], params["rb_b2"][r])
        out = conv(y, params["rb_w2"][r], 1)
        cur = out + res
        short.append(cur)
    cat = jnp.concatenate(list(long_term_mem) + short, axis=-1)
    y = bn_relu(cat, params["gate_s"], params["gate_b"])
    gw = params["gate_w"]
    return conv(y, gw.reshape(1, 1, gw.shape[0], gw.shape[1]), 0)


# ----------------------------------------------------------------------------
if __name__ == "__main__":
    channels, num_resblock, num_memblock = 4, 3, 2
    B, H, W = 2, 16, 16

    key = jax.random.PRNGKey(0)
    key, pkey = jax.random.split(key)
    params = init_params(pkey, channels, num_resblock, num_memblock)
    packed = pack_params(params, W)

    key, xk = jax.random.split(key)
    x = jax.random.normal(xk, (B, H, W, channels), jnp.float32)
    long_term_mem = []
    for _ in range(num_memblock):
        key, mk = jax.random.split(key)
        long_term_mem.append(
            jax.random.normal(mk, (B, H, W, channels), jnp.float32))

    ltm = list(long_term_mem)          # mutated by forward (gate_out appended)
    gate_out = memory_block_forward(packed, x, ltm)
    gate_out = jax.block_until_ready(gate_out)

    ref = memory_block_ref(params, x, list(long_term_mem))
    max_diff = float(jnp.max(jnp.abs(gate_out - ref)))
    rel = float(jnp.linalg.norm(gate_out - ref) / (jnp.linalg.norm(ref) + 1e-12))
    # bf16 MXU operands (f32 accumulation) -> tolerance loosened vs pure-f32.
    ok = (gate_out.shape == (B, H, W, channels)
          and len(ltm) == num_memblock + 1
          and max_diff < 2.5e-1 and rel < 5e-2)
    if not ok:
        raise AssertionError(
            f"kernel mismatch vs reference: max|diff|={max_diff:.4g}, rel={rel:.4g}")

    print("KERNEL_OK")
</pallas_src>

<mosaic_0001>
module attributes {stable_mosaic.version = 11 : i64} {
  func.func @kernel(%arg0: i32, %arg1: memref<1x16x64xf32, #tpu.memory_space<vmem>>, %arg2: memref<1x16x64xf32, #tpu.memory_space<vmem>>, %arg3: memref<1x16x64xf32, #tpu.memory_space<vmem>>, %arg4: memref<3x1x64xf32, #tpu.memory_space<vmem>>, %arg5: memref<3x1x64xf32, #tpu.memory_space<vmem>>, %arg6: memref<3x3x64x64xbf16, #tpu.memory_space<vmem>>, %arg7: memref<3x1x64xf32, #tpu.memory_space<vmem>>, %arg8: memref<3x1x64xf32, #tpu.memory_space<vmem>>, %arg9: memref<3x3x64x64xbf16, #tpu.memory_space<vmem>>, %arg10: memref<5x1x64xf32, #tpu.memory_space<vmem>>, %arg11: memref<5x1x64xf32, #tpu.memory_space<vmem>>, %arg12: memref<5x64x64xbf16, #tpu.memory_space<vmem>>, %arg13: memref<1x16x64xf32, #tpu.memory_space<vmem>>) attributes {dimension_semantics = [#tpu.dimension_semantics<parallel>], iteration_bounds = array<i64: 2>, scalar_prefetch = 0 : i64, scratch_operands = 0 : i64, tpu.core_type = #tpu.core_type<tc>, window_params = [{transform_indices = @transform_0, window_bounds = array<i64: 1, 16, 64>}, {transform_indices = @transform_1, window_bounds = array<i64: 1, 16, 64>}, {transform_indices = @transform_2, window_bounds = array<i64: 1, 16, 64>}, {pipeline_mode = #tpu.pipeline_mode<synchronous>, transform_indices = @transform_3, window_bounds = array<i64: 3, 1, 64>}, {pipeline_mode = #tpu.pipeline_mode<synchronous>, transform_indices = @transform_4, window_bounds = array<i64: 3, 1, 64>}, {pipeline_mode = #tpu.pipeline_mode<synchronous>, transform_indices = @transform_5, window_bounds = array<i64: 3, 3, 64, 64>}, {pipeline_mode = #tpu.pipeline_mode<synchronous>, transform_indices = @transform_6, window_bounds = array<i64: 3, 1, 64>}, {pipeline_mode = #tpu.pipeline_mode<synchronous>, transform_indices = @transform_7, window_bounds = array<i64: 3, 1, 64>}, {pipeline_mode = #tpu.pipeline_mode<synchronous>, transform_indices = @transform_8, window_bounds = array<i64: 3, 3, 64, 64>}, {pipeline_mode = #tpu.pipeline_mode<synchronous>, transform_indices = @transform_9, window_bounds = array<i64: 5, 1, 64>}, {pipeline_mode = #tpu.pipeline_mode<synchronous>, transform_indices = @transform_10, window_bounds = array<i64: 5, 1, 64>}, {pipeline_mode = #tpu.pipeline_mode<synchronous>, transform_indices = @transform_11, window_bounds = array<i64: 5, 64, 64>}, {transform_indices = @transform_12, window_bounds = array<i64: 1, 16, 64>}]} {
    %cst = arith.constant 0.000000e+00 : f32
    %0 = vector.broadcast %cst : f32 to vector<1x64xf32>
    %cst_0 = arith.constant 0.000000e+00 : f32
    %1 = vector.broadcast %cst_0 : f32 to vector<16x64xf32>
    %c0 = arith.constant 0 : index
    %c0_1 = arith.constant 0 : index
    %c0_2 = arith.constant 0 : index
    %2 = vector.load %arg2[%c0, %c0_1, %c0_2] : memref<1x16x64xf32, #tpu.memory_space<vmem>>, vector<1x16x64xf32>
    %3 = vector.shape_cast %2 : vector<1x16x64xf32> to vector<16x64xf32>
    %c0_3 = arith.constant 0 : index
    %c0_4 = arith.constant 0 : index
    %c0_5 = arith.constant 0 : index
    %4 = vector.load %arg10[%c0_3, %c0_4, %c0_5] : memref<5x1x64xf32, #tpu.memory_space<vmem>>, vector<1x1x64xf32>
    %5 = vector.shape_cast %4 : vector<1x1x64xf32> to vector<1x64xf32>
    %c0_6 = arith.constant 0 : index
    %c0_7 = arith.constant 0 : index
    %c0_8 = arith.constant 0 : index
    %6 = vector.load %arg11[%c0_6, %c0_7, %c0_8] : memref<5x1x64xf32, #tpu.memory_space<vmem>>, vector<1x1x64xf32>
    %7 = vector.shape_cast %6 : vector<1x1x64xf32> to vector<1x64xf32>
    %8 = vector.broadcast %5 : vector<1x64xf32> to vector<16x64xf32>
    %9 = arith.mulf %3, %8 : vector<16x64xf32>
    %10 = vector.broadcast %7 : vector<1x64xf32> to vector<16x64xf32>
    %11 = arith.addf %9, %10 : vector<16x64xf32>
    %cst_9 = arith.constant 0.000000e+00 : f32
    %12 = vector.broadcast %cst_9 : f32 to vector<16x64xf32>
    %13 = arith.maximumf %11, %12 : vector<16x64xf32>
    %14 = arith.truncf %13 : vector<16x64xf32> to vector<16x64xbf16>
    %c0_10 = arith.constant 0 : index
    %c0_11 = arith.constant 0 : index
    %c0_12 = arith.constant 0 : index
    %15 = vector.load %arg12[%c0_10, %c0_11, %c0_12] : memref<5x64x64xbf16, #tpu.memory_space<vmem>>, vector<1x64x64xbf16>
    %16 = vector.shape_cast %15 : vector<1x64x64xbf16> to vector<64x64xbf16>
    %cst_13 = arith.constant dense<0.000000e+00> : vector<16x64xf32>
    %17 = tpu.matmul %14, %16, %cst_13 {dimension_numbers = #tpu.dot_dimension_numbers<[1], [0], [0], [1], [0, 0, 1, 1], [], []>} : vector<16x64xbf16>, vector<64x64xbf16>, vector<16x64xf32> -> vector<16x64xf32>
    %18 = arith.addf %1, %17 : vector<16x64xf32>
    %c0_14 = arith.constant 0 : index
    %c0_15 = arith.constant 0 : index
    %c0_16 = arith.constant 0 : index
    %19 = vector.load %arg3[%c0_14, %c0_15, %c0_16] : memref<1x16x64xf32, #tpu.memory_space<vmem>>, vector<1x16x64xf32>
    %20 = vector.shape_cast %19 : vector<1x16x64xf32> to vector<16x64xf32>
    %c1 = arith.constant 1 : index
    %c0_17 = arith.constant 0 : index
    %c0_18 = arith.constant 0 : index
    %21 = vector.load %arg10[%c1, %c0_17, %c0_18] : memref<5x1x64xf32, #tpu.memory_space<vmem>>, vector<1x1x64xf32>
    %22 = vector.shape_cast %21 : vector<1x1x64xf32> to vector<1x64xf32>
    %c1_19 = arith.constant 1 : index
    %c0_20 = arith.constant 0 : index
    %c0_21 = arith.constant 0 : index
    %23 = vector.load %arg11[%c1_19, %c0_20, %c0_21] : memref<5x1x64xf32, #tpu.memory_space<vmem>>, vector<1x1x64xf32>
    %24 = vector.shape_cast %23 : vector<1x1x64xf32> to vector<1x64xf32>
    %25 = vector.broadcast %22 : vector<1x64xf32> to vector<16x64xf32>
    %26 = arith.mulf %20, %25 : vector<16x64xf32>
    %27 = vector.broadcast %24 : vector<1x64xf32> to vector<16x64xf32>
    %28 = arith.addf %26, %27 : vector<16x64xf32>
    %cst_22 = arith.constant 0.000000e+00 : f32
    %29 = vector.broadcast %cst_22 : f32 to vector<16x64xf32>
    %30 = arith.maximumf %28, %29 : vector<16x64xf32>
    %31 = arith.truncf %30 : vector<16x64xf32> to vector<16x64xbf16>
    %c1_23 = arith.constant 1 : index
    %c0_24 = arith.constant 0 : index
    %c0_25 = arith.constant 0 : index
    %32 = vector.load %arg12[%c1_23, %c0_24, %c0_25] : memref<5x64x64xbf16, #tpu.memory_space<vmem>>, vector<1x64x64xbf16>
    %33 = vector.shape_cast %32 : vector<1x64x64xbf16> to vector<64x64xbf16>
    %cst_26 = arith.constant dense<0.000000e+00> : vector<16x64xf32>
    %34 = tpu.matmul %31, %33, %cst_26 {dimension_numbers = #tpu.dot_dimension_numbers<[1], [0], [0], [1], [0, 0, 1, 1], [], []>} : vector<16x64xbf16>, vector<64x64xbf16>, vector<16x64xf32> -> vector<16x64xf32>
    %35 = arith.addf %18, %34 : vector<16x64xf32>
    %c0_27 = arith.constant 0 : index
    %c0_28 = arith.constant 0 : index
    %c0_29 = arith.constant 0 : index
    %36 = vector.load %arg1[%c0_27, %c0_28, %c0_29] : memref<1x16x64xf32, #tpu.memory_space<vmem>>, vector<1x16x64xf32>
    %37 = vector.shape_cast %36 : vector<1x16x64xf32> to vector<16x64xf32>
    %c0_30 = arith.constant 0 : index
    %c0_31 = arith.constant 0 : index
    %c0_32 = arith.constant 0 : index
    %38 = vector.load %arg4[%c0_30, %c0_31, %c0_32] : memref<3x1x64xf32, #tpu.memory_space<vmem>>, vector<1x1x64xf32>
    %39 = vector.shape_cast %38 : vector<1x1x64xf32> to vector<1x64xf32>
    %c0_33 = arith.constant 0 : index
    %c0_34 = arith.constant 0 : index
    %c0_35 = arith.constant 0 : index
    %40 = vector.load %arg5[%c0_33, %c0_34, %c0_35] : memref<3x1x64xf32, #tpu.memory_space<vmem>>, vector<1x1x64xf32>
    %41 = vector.shape_cast %40 : vector<1x1x64xf32> to vector<1x64xf32>
    %42 = vector.broadcast %39 : vector<1x64xf32> to vector<16x64xf32>
    %43 = arith.mulf %37, %42 : vector<16x64xf32>
    %44 = vector.broadcast %41 : vector<1x64xf32> to vector<16x64xf32>
    %45 = arith.addf %43, %44 : vector<16x64xf32>
    %cst_36 = arith.constant 0.000000e+00 : f32
    %46 = vector.broadcast %cst_36 : f32 to vector<16x64xf32>
    %47 = arith.maximumf %45, %46 : vector<16x64xf32>
    %48 = vector.extract_strided_slice %47 {offsets = [0, 0], sizes = [15, 64], strides = [1, 1]} : vector<16x64xf32> to vector<15x64xf32>
    %49 = tpu.concatenate %0, %48 in 0 : vector<1x64xf32>, vector<15x64xf32> -> vector<16x64xf32>
    %50 = vector.extract_strided_slice %47 {offsets = [1, 0], sizes = [15, 64], strides = [1, 1]} : vector<16x64xf32> to vector<15x64xf32>
    %51 = tpu.concatenate %50, %0 in 0 : vector<15x64xf32>, vector<1x64xf32> -> vector<16x64xf32>
    %52 = arith.truncf %49 : vector<16x64xf32> to vector<16x64xbf16>
    %c0_37 = arith.constant 0 : index
    %c0_38 = arith.constant 0 : index
    %c0_39 = arith.constant 0 : index
    %c0_40 = arith.constant 0 : index
    %53 = vector.load %arg6[%c0_37, %c0_38, %c0_39, %c0_40] : memref<3x3x64x64xbf16, #tpu.memory_space<vmem>>, vector<1x1x64x64xbf16>
    %54 = vector.shape_cast %53 : vector<1x1x64x64xbf16> to vector<64x64xbf16>
    %cst_41 = arith.constant dense<0.000000e+00> : vector<16x64xf32>
    %55 = tpu.matmul %52, %54, %cst_41 {dimension_numbers = #tpu.dot_dimension_numbers<[1], [0], [0], [1], [0, 0, 1, 1], [], []>} : vector<16x64xbf16>, vector<64x64xbf16>, vector<16x64xf32> -> vector<16x64xf32>
    %56 = arith.truncf %47 : vector<16x64xf32> to vector<16x64xbf16>
    %c0_42 = arith.constant 0 : index
    %c1_43 = arith.constant 1 : index
    %c0_44 = arith.constant 0 : index
    %c0_45 = arith.constant 0 : index
    %57 = vector.load %arg6[%c0_42, %c1_43, %c0_44, %c0_45] : memref<3x3x64x64xbf16, #tpu.memory_space<vmem>>, vector<1x1x64x64xbf16>
    %58 = vector.shape_cast %57 : vector<1x1x64x64xbf16> to vector<64x64xbf16>
    %cst_46 = arith.constant dense<0.000000e+00> : vector<16x64xf32>
    %59 = tpu.matmul %56, %58, %cst_46 {dimension_numbers = #tpu.dot_dimension_numbers<[1], [0], [0], [1], [0, 0, 1, 1], [], []>} : vector<16x64xbf16>, vector<64x64xbf16>, vector<16x64xf32> -> vector<16x64xf32>
    %60 = arith.addf %55, %59 : vector<16x64xf32>
    %61 = arith.truncf %51 : vector<16x64xf32> to vector<16x64xbf16>
    %c0_47 = arith.constant 0 : index
    %c2 = arith.constant 2 : index
    %c0_48 = arith.constant 0 : index
    %c0_49 = arith.constant 0 : index
    %62 = vector.load %arg6[%c0_47, %c2, %c0_48, %c0_49] : memref<3x3x64x64xbf16, #tpu.memory_space<vmem>>, vector<1x1x64x64xbf16>
    %63 = vector.shape_cast %62 : vector<1x1x64x64xbf16> to vector<64x64xbf16>
    %cst_50 = arith.constant dense<0.000000e+00> : vector<16x64xf32>
    %64 = tpu.matmul %61, %63, %cst_50 {dimension_numbers = #tpu.dot_dimension_numbers<[1], [0], [0], [1], [0, 0, 1, 1], [], []>} : vector<16x64xbf16>, vector<64x64xbf16>, vector<16x64xf32> -> vector<16x64xf32>
    %65 = arith.addf %60, %64 : vector<16x64xf32>
    %c0_51 = arith.constant 0 : index
    %c0_52 = arith.constant 0 : index
    %c0_53 = arith.constant 0 : index
    %66 = vector.load %arg7[%c0_51, %c0_52, %c0_53] : memref<3x1x64xf32, #tpu.memory_space<vmem>>, vector<1x1x64xf32>
    %67 = vector.shape_cast %66 : vector<1x1x64xf32> to vector<1x64xf32>
    %c0_54 = arith.constant 0 : index
    %c0_55 = arith.constant 0 : index
    %c0_56 = arith.constant 0 : index
    %68 = vector.load %arg8[%c0_54, %c0_55, %c0_56] : memref<3x1x64xf32, #tpu.memory_space<vmem>>, vector<1x1x64xf32>
    %69 = vector.shape_cast %68 : vector<1x1x64xf32> to vector<1x64xf32>
    %70 = vector.broadcast %67 : vector<1x64xf32> to vector<16x64xf32>
    %71 = arith.mulf %65, %70 : vector<16x64xf32>
    %72 = vector.broadcast %69 : vector<1x64xf32> to vector<16x64xf32>
    %73 = arith.addf %71, %72 : vector<16x64xf32>
    %cst_57 = arith.constant 0.000000e+00 : f32
    %74 = vector.broadcast %cst_57 : f32 to vector<16x64xf32>
    %75 = arith.maximumf %73, %74 : vector<16x64xf32>
    %76 = vector.extract_strided_slice %75 {offsets = [0, 0], sizes = [15, 64], strides = [1, 1]} : vector<16x64xf32> to vector<15x64xf32>
    %77 = tpu.concatenate %0, %76 in 0 : vector<1x64xf32>, vector<15x64xf32> -> vector<16x64xf32>
    %78 = vector.extract_strided_slice %75 {offsets = [1, 0], sizes = [15, 64], strides = [1, 1]} : vector<16x64xf32> to vector<15x64xf32>
    %79 = tpu.concatenate %78, %0 in 0 : vector<15x64xf32>, vector<1x64xf32> -> vector<16x64xf32>
    %80 = arith.truncf %77 : vector<16x64xf32> to vector<16x64xbf16>
    %c0_58 = arith.constant 0 : index
    %c0_59 = arith.constant 0 : index
    %c0_60 = arith.constant 0 : index
    %c0_61 = arith.constant 0 : index
    %81 = vector.load %arg9[%c0_58, %c0_59, %c0_60, %c0_61] : memref<3x3x64x64xbf16, #tpu.memory_space<vmem>>, vector<1x1x64x64xbf16>
    %82 = vector.shape_cast %81 : vector<1x1x64x64xbf16> to vector<64x64xbf16>
    %cst_62 = arith.constant dense<0.000000e+00> : vector<16x64xf32>
    %83 = tpu.matmul %80, %82, %cst_62 {dimension_numbers = #tpu.dot_dimension_numbers<[1], [0], [0], [1], [0, 0, 1, 1], [], []>} : vector<16x64xbf16>, vector<64x64xbf16>, vector<16x64xf32> -> vector<16x64xf32>
    %84 = arith.truncf %75 : vector<16x64xf32> to vector<16x64xbf16>
    %c0_63 = arith.constant 0 : index
    %c1_64 = arith.constant 1 : index
    %c0_65 = arith.constant 0 : index
    %c0_66 = arith.constant 0 : index
    %85 = vector.load %arg9[%c0_63, %c1_64, %c0_65, %c0_66] : memref<3x3x64x64xbf16, #tpu.memory_space<vmem>>, vector<1x1x64x64xbf16>
    %86 = vector.shape_cast %85 : vector<1x1x64x64xbf16> to vector<64x64xbf16>
    %cst_67 = arith.constant dense<0.000000e+00> : vector<16x64xf32>
    %87 = tpu.matmul %84, %86, %cst_67 {dimension_numbers = #tpu.dot_dimension_numbers<[1], [0], [0], [1], [0, 0, 1, 1], [], []>} : vector<16x64xbf16>, vector<64x64xbf16>, vector<16x64xf32> -> vector<16x64xf32>
    %88 = arith.addf %83, %87 : vector<16x64xf32>
    %89 = arith.truncf %79 : vector<16x64xf32> to vector<16x64xbf16>
    %c0_68 = arith.constant 0 : index
    %c2_69 = arith.constant 2 : index
    %c0_70 = arith.constant 0 : index
    %c0_71 = arith.constant 0 : index
    %90 = vector.load %arg9[%c0_68, %c2_69, %c0_70, %c0_71] : memref<3x3x64x64xbf16, #tpu.memory_space<vmem>>, vector<1x1x64x64xbf16>
    %91 = vector.shape_cast %90 : vector<1x1x64x64xbf16> to vector<64x64xbf16>
    %cst_72 = arith.constant dense<0.000000e+00> : vector<16x64xf32>
    %92 = tpu.matmul %89, %91, %cst_72 {dimension_numbers = #tpu.dot_dimension_numbers<[1], [0], [0], [1], [0, 0, 1, 1], [], []>} : vector<16x64xbf16>, vector<64x64xbf16>, vector<16x64xf32> -> vector<16x64xf32>
    %93 = arith.addf %88, %92 : vector<16x64xf32>
    %94 = arith.addf %93, %37 : vector<16x64xf32>
    %c2_73 = arith.constant 2 : index
    %c0_74 = arith.constant 0 : index
    %c0_75 = arith.constant 0 : index
    %95 = vector.load %arg10[%c2_73, %c0_74, %c0_75] : memref<5x1x64xf32, #tpu.memory_space<vmem>>, vector<1x1x64xf32>
    %96 = vector.shape_cast %95 : vector<1x1x64xf32> to vector<1x64xf32>
    %c2_76 = arith.constant 2 : index
    %c0_77 = arith.constant 0 : index
    %c0_78 = arith.constant 0 : index
    %97 = vector.load %arg11[%c2_76, %c0_77, %c0_78] : memref<5x1x64xf32, #tpu.memory_space<vmem>>, vector<1x1x64xf32>
    %98 = vector.shape_cast %97 : vector<1x1x64xf32> to vector<1x64xf32>
    %99 = vector.broadcast %96 : vector<1x64xf32> to vector<16x64xf32>
    %100 = arith.mulf %94, %99 : vector<16x64xf32>
    %101 = vector.broadcast %98 : vector<1x64xf32> to vector<16x64xf32>
    %102 = arith.addf %100, %101 : vector<16x64xf32>
    %cst_79 = arith.constant 0.000000e+00 : f32
    %103 = vector.broadcast %cst_79 : f32 to vector<16x64xf32>
    %104 = arith.maximumf %102, %103 : vector<16x64xf32>
    %105 = arith.truncf %104 : vector<16x64xf32> to vector<16x64xbf16>
    %c2_80 = arith.constant 2 : index
    %c0_81 = arith.constant 0 : index
    %c0_82 = arith.constant 0 : index
    %106 = vector.load %arg12[%c2_80, %c0_81, %c0_82] : memref<5x64x64xbf16, #tpu.memory_space<vmem>>, vector<1x64x64xbf16>
    %107 = vector.shape_cast %106 : vector<1x64x64xbf16> to vector<64x64xbf16>
    %cst_83 = arith.constant dense<0.000000e+00> : vector<16x64xf32>
    %108 = tpu.matmul %105, %107, %cst_83 {dimension_numbers = #tpu.dot_dimension_numbers<[1], [0], [0], [1], [0, 0, 1, 1], [], []>} : vector<16x64xbf16>, vector<64x64xbf16>, vector<16x64xf32> -> vector<16x64xf32>
    %109 = arith.addf %35, %108 : vector<16x64xf32>
    %c1_84 = arith.constant 1 : index
    %c0_85 = arith.constant 0 : index
    %c0_86 = arith.constant 0 : index
    %110 = vector.load %arg4[%c1_84, %c0_85, %c0_86] : memref<3x1x64xf32, #tpu.memory_space<vmem>>, vector<1x1x64xf32>
    %111 = vector.shape_cast %110 : vector<1x1x64xf32> to vector<1x64xf32>
    %c1_87 = arith.constant 1 : index
    %c0_88 = arith.constant 0 : index
    %c0_89 = arith.constant 0 : index
    %112 = vector.load %arg5[%c1_87, %c0_88, %c0_89] : memref<3x1x64xf32, #tpu.memory_space<vmem>>, vector<1x1x64xf32>
    %113 = vector.shape_cast %112 : vector<1x1x64xf32> to vector<1x64xf32>
    %114 = vector.broadcast %111 : vector<1x64xf32> to vector<16x64xf32>
    %115 = arith.mulf %94, %114 : vector<16x64xf32>
    %116 = vector.broadcast %113 : vector<1x64xf32> to vector<16x64xf32>
    %117 = arith.addf %115, %116 : vector<16x64xf32>
    %cst_90 = arith.constant 0.000000e+00 : f32
    %118 = vector.broadcast %cst_90 : f32 to vector<16x64xf32>
    %119 = arith.maximumf %117, %118 : vector<16x64xf32>
    %120 = vector.extract_strided_slice %119 {offsets = [0, 0], sizes = [15, 64], strides = [1, 1]} : vector<16x64xf32> to vector<15x64xf32>
    %121 = tpu.concatenate %0, %120 in 0 : vector<1x64xf32>, vector<15x64xf32> -> vector<16x64xf32>
    %122 = vector.extract_strided_slice %119 {offsets = [1, 0], sizes = [15, 64], strides = [1, 1]} : vector<16x64xf32> to vector<15x64xf32>
    %123 = tpu.concatenate %122, %0 in 0 : vector<15x64xf32>, vector<1x64xf32> -> vector<16x64xf32>
    %124 = arith.truncf %121 : vector<16x64xf32> to vector<16x64xbf16>
    %c1_91 = arith.constant 1 : index
    %c0_92 = arith.constant 0 : index
    %c0_93 = arith.constant 0 : index
    %c0_94 = arith.constant 0 : index
    %125 = vector.load %arg6[%c1_91, %c0_92, %c0_93, %c0_94] : memref<3x3x64x64xbf16, #tpu.memory_space<vmem>>, vector<1x1x64x64xbf16>
    %126 = vector.shape_cast %125 : vector<1x1x64x64xbf16> to vector<64x64xbf16>
    %cst_95 = arith.constant dense<0.000000e+00> : vector<16x64xf32>
    %127 = tpu.matmul %124, %126, %cst_95 {dimension_numbers = #tpu.dot_dimension_numbers<[1], [0], [0], [1], [0, 0, 1, 1], [], []>} : vector<16x64xbf16>, vector<64x64xbf16>, vector<16x64xf32> -> vector<16x64xf32>
    %128 = arith.truncf %119 : vector<16x64xf32> to vector<16x64xbf16>
    %c1_96 = arith.constant 1 : index
    %c1_97 = arith.constant 1 : index
    %c0_98 = arith.constant 0 : index
    %c0_99 = arith.constant 0 : index
    %129 = vector.load %arg6[%c1_96, %c1_97, %c0_98, %c0_99] : memref<3x3x64x64xbf16, #tpu.memory_space<vmem>>, vector<1x1x64x64xbf16>
    %130 = vector.shape_cast %129 : vector<1x1x64x64xbf16> to vector<64x64xbf16>
    %cst_100 = arith.constant dense<0.000000e+00> : vector<16x64xf32>
    %131 = tpu.matmul %128, %130, %cst_100 {dimension_numbers = #tpu.dot_dimension_numbers<[1], [0], [0], [1], [0, 0, 1, 1], [], []>} : vector<16x64xbf16>, vector<64x64xbf16>, vector<16x64xf32> -> vector<16x64xf32>
    %132 = arith.addf %127, %131 : vector<16x64xf32>
    %133 = arith.truncf %123 : vector<16x64xf32> to vector<16x64xbf16>
    %c1_101 = arith.constant 1 : index
    %c2_102 = arith.constant 2 : index
    %c0_103 = arith.constant 0 : index
    %c0_104 = arith.constant 0 : index
    %134 = vector.load %arg6[%c1_101, %c2_102, %c0_103, %c0_104] : memref<3x3x64x64xbf16, #tpu.memory_space<vmem>>, vector<1x1x64x64xbf16>
    %135 = vector.shape_cast %134 : vector<1x1x64x64xbf16> to vector<64x64xbf16>
    %cst_105 = arith.constant dense<0.000000e+00> : vector<16x64xf32>
    %136 = tpu.matmul %133, %135, %cst_105 {dimension_numbers = #tpu.dot_dimension_numbers<[1], [0], [0], [1], [0, 0, 1, 1], [], []>} : vector<16x64xbf16>, vector<64x64xbf16>, vector<16x64xf32> -> vector<16x64xf32>
    %137 = arith.addf %132, %136 : vector<16x64xf32>
    %c1_106 = arith.constant 1 : index
    %c0_107 = arith.constant 0 : index
    %c0_108 = arith.constant 0 : index
    %138 = vector.load %arg7[%c1_106, %c0_107, %c0_108] : memref<3x1x64xf32, #tpu.memory_space<vmem>>, vector<1x1x64xf32>
    %139 = vector.shape_cast %138 : vector<1x1x64xf32> to vector<1x64xf32>
    %c1_109 = arith.constant 1 : index
    %c0_110 = arith.constant 0 : index
    %c0_111 = arith.constant 0 : index
    %140 = vector.load %arg8[%c1_109, %c0_110, %c0_111] : memref<3x1x64xf32, #tpu.memory_space<vmem>>, vector<1x1x64xf32>
    %141 = vector.shape_cast %140 : vector<1x1x64xf32> to vector<1x64xf32>
    %142 = vector.broadcast %139 : vector<1x64xf32> to vector<16x64xf32>
    %143 = arith.mulf %137, %142 : vector<16x64xf32>
    %144 = vector.broadcast %141 : vector<1x64xf32> to vector<16x64xf32>
    %145 = arith.addf %143, %144 : vector<16x64xf32>
    %cst_112 = arith.constant 0.000000e+00 : f32
    %146 = vector.broadcast %cst_112 : f32 to vector<16x64xf32>
    %147 = arith.maximumf %145, %146 : vector<16x64xf32>
    %148 = vector.extract_strided_slice %147 {offsets = [0, 0], sizes = [15, 64], strides = [1, 1]} : vector<16x64xf32> to vector<15x64xf32>
    %149 = tpu.concatenate %0, %148 in 0 : vector<1x64xf32>, vector<15x64xf32> -> vector<16x64xf32>
    %150 = vector.extract_strided_slice %147 {offsets = [1, 0], sizes = [15, 64], strides = [1, 1]} : vector<16x64xf32> to vector<15x64xf32>
    %151 = tpu.concatenate %150, %0 in 0 : vector<15x64xf32>, vector<1x64xf32> -> vector<16x64xf32>
    %152 = arith.truncf %149 : vector<16x64xf32> to vector<16x64xbf16>
    %c1_113 = arith.constant 1 : index
    %c0_114 = arith.constant 0 : index
    %c0_115 = arith.constant 0 : index
    %c0_116 = arith.constant 0 : index
    %153 = vector.load %arg9[%c1_113, %c0_114, %c0_115, %c0_116] : memref<3x3x64x64xbf16, #tpu.memory_space<vmem>>, vector<1x1x64x64xbf16>
    %154 = vector.shape_cast %153 : vector<1x1x64x64xbf16> to vector<64x64xbf16>
    %cst_117 = arith.constant dense<0.000000e+00> : vector<16x64xf32>
    %155 = tpu.matmul %152, %154, %cst_117 {dimension_numbers = #tpu.dot_dimension_numbers<[1], [0], [0], [1], [0, 0, 1, 1], [], []>} : vector<16x64xbf16>, vector<64x64xbf16>, vector<16x64xf32> -> vector<16x64xf32>
    %156 = arith.truncf %147 : vector<16x64xf32> to vector<16x64xbf16>
    %c1_118 = arith.constant 1 : index
    %c1_119 = arith.constant 1 : index
    %c0_120 = arith.constant 0 : index
    %c0_121 = arith.constant 0 : index
    %157 = vector.load %arg9[%c1_118, %c1_119, %c0_120, %c0_121] : memref<3x3x64x64xbf16, #tpu.memory_space<vmem>>, vector<1x1x64x64xbf16>
    %158 = vector.shape_cast %157 : vector<1x1x64x64xbf16> to vector<64x64xbf16>
    %cst_122 = arith.constant dense<0.000000e+00> : vector<16x64xf32>
    %159 = tpu.matmul %156, %158, %cst_122 {dimension_numbers = #tpu.dot_dimension_numbers<[1], [0], [0], [1], [0, 0, 1, 1], [], []>} : vector<16x64xbf16>, vector<64x64xbf16>, vector<16x64xf32> -> vector<16x64xf32>
    %160 = arith.addf %155, %159 : vector<16x64xf32>
    %161 = arith.truncf %151 : vector<16x64xf32> to vector<16x64xbf16>
    %c1_123 = arith.constant 1 : index
    %c2_124 = arith.constant 2 : index
    %c0_125 = arith.constant 0 : index
    %c0_126 = arith.constant 0 : index
    %162 = vector.load %arg9[%c1_123, %c2_124, %c0_125, %c0_126] : memref<3x3x64x64xbf16, #tpu.memory_space<vmem>>, vector<1x1x64x64xbf16>
    %163 = vector.shape_cast %162 : vector<1x1x64x64xbf16> to vector<64x64xbf16>
    %cst_127 = arith.constant dense<0.000000e+00> : vector<16x64xf32>
    %164 = tpu.matmul %161, %163, %cst_127 {dimension_numbers = #tpu.dot_dimension_numbers<[1], [0], [0], [1], [0, 0, 1, 1], [], []>} : vector<16x64xbf16>, vector<64x64xbf16>, vector<16x64xf32> -> vector<16x64xf32>
    %165 = arith.addf %160, %164 : vector<16x64xf32>
    %166 = arith.addf %165, %94 : vector<16x64xf32>
    %c3 = arith.constant 3 : index
    %c0_128 = arith.constant 0 : index
    %c0_129 = arith.constant 0 : index
    %167 = vector.load %arg10[%c3, %c0_128, %c0_129] : memref<5x1x64xf32, #tpu.memory_space<vmem>>, vector<1x1x64xf32>
    %168 = vector.shape_cast %167 : vector<1x1x64xf32> to vector<1x64xf32>
    %c3_130 = arith.constant 3 : index
    %c0_131 = arith.constant 0 : index
    %c0_132 = arith.constant 0 : index
    %169 = vector.load %arg11[%c3_130, %c0_131, %c0_132] : memref<5x1x64xf32, #tpu.memory_space<vmem>>, vector<1x1x64xf32>
    %170 = vector.shape_cast %169 : vector<1x1x64xf32> to vector<1x64xf32>
    %171 = vector.broadcast %168 : vector<1x64xf32> to vector<16x64xf32>
    %172 = arith.mulf %166, %171 : vector<16x64xf32>
    %173 = vector.broadcast %170 : vector<1x64xf32> to vector<16x64xf32>
    %174 = arith.addf %172, %173 : vector<16x64xf32>
    %cst_133 = arith.constant 0.000000e+00 : f32
    %175 = vector.broadcast %cst_133 : f32 to vector<16x64xf32>
    %176 = arith.maximumf %174, %175 : vector<16x64xf32>
    %177 = arith.truncf %176 : vector<16x64xf32> to vector<16x64xbf16>
    %c3_134 = arith.constant 3 : index
    %c0_135 = arith.constant 0 : index
    %c0_136 = arith.constant 0 : index
    %178 = vector.load %arg12[%c3_134, %c0_135, %c0_136] : memref<5x64x64xbf16, #tpu.memory_space<vmem>>, vector<1x64x64xbf16>
    %179 = vector.shape_cast %178 : vector<1x64x64xbf16> to vector<64x64xbf16>
    %cst_137 = arith.constant dense<0.000000e+00> : vector<16x64xf32>
    %180 = tpu.matmul %177, %179, %cst_137 {dimension_numbers = #tpu.dot_dimension_numbers<[1], [0], [0], [1], [0, 0, 1, 1], [], []>} : vector<16x64xbf16>, vector<64x64xbf16>, vector<16x64xf32> -> vector<16x64xf32>
    %181 = arith.addf %109, %180 : vector<16x64xf32>
    %c2_138 = arith.constant 2 : index
    %c0_139 = arith.constant 0 : index
    %c0_140 = arith.constant 0 : index
    %182 = vector.load %arg4[%c2_138, %c0_139, %c0_140] : memref<3x1x64xf32, #tpu.memory_space<vmem>>, vector<1x1x64xf32>
    %183 = vector.shape_cast %182 : vector<1x1x64xf32> to vector<1x64xf32>
    %c2_141 = arith.constant 2 : index
    %c0_142 = arith.constant 0 : index
    %c0_143 = arith.constant 0 : index
    %184 = vector.load %arg5[%c2_141, %c0_142, %c0_143] : memref<3x1x64xf32, #tpu.memory_space<vmem>>, vector<1x1x64xf32>
    %185 = vector.shape_cast %184 : vector<1x1x64xf32> to vector<1x64xf32>
    %186 = vector.broadcast %183 : vector<1x64xf32> to vector<16x64xf32>
    %187 = arith.mulf %166, %186 : vector<16x64xf32>
    %188 = vector.broadcast %185 : vector<1x64xf32> to vector<16x64xf32>
    %189 = arith.addf %187, %188 : vector<16x64xf32>
    %cst_144 = arith.constant 0.000000e+00 : f32
    %190 = vector.broadcast %cst_144 : f32 to vector<16x64xf32>
    %191 = arith.maximumf %189, %190 : vector<16x64xf32>
    %192 = vector.extract_strided_slice %191 {offsets = [0, 0], sizes = [15, 64], strides = [1, 1]} : vector<16x64xf32> to vector<15x64xf32>
    %193 = tpu.concatenate %0, %192 in 0 : vector<1x64xf32>, vector<15x64xf32> -> vector<16x64xf32>
    %194 = vector.extract_strided_slice %191 {offsets = [1, 0], sizes = [15, 64], strides = [1, 1]} : vector<16x64xf32> to vector<15x64xf32>
    %195 = tpu.concatenate %194, %0 in 0 : vector<15x64xf32>, vector<1x64xf32> -> vector<16x64xf32>
    %196 = arith.truncf %193 : vector<16x64xf32> to vector<16x64xbf16>
    %c2_145 = arith.constant 2 : index
    %c0_146 = arith.constant 0 : index
    %c0_147 = arith.constant 0 : index
    %c0_148 = arith.constant 0 : index
    %197 = vector.load %arg6[%c2_145, %c0_146, %c0_147, %c0_148] : memref<3x3x64x64xbf16, #tpu.memory_space<vmem>>, vector<1x1x64x64xbf16>
    %198 = vector.shape_cast %197 : vector<1x1x64x64xbf16> to vector<64x64xbf16>
    %cst_149 = arith.constant dense<0.000000e+00> : vector<16x64xf32>
    %199 = tpu.matmul %196, %198, %cst_149 {dimension_numbers = #tpu.dot_dimension_numbers<[1], [0], [0], [1], [0, 0, 1, 1], [], []>} : vector<16x64xbf16>, vector<64x64xbf16>, vector<16x64xf32> -> vector<16x64xf32>
    %200 = arith.truncf %191 : vector<16x64xf32> to vector<16x64xbf16>
    %c2_150 = arith.constant 2 : index
    %c1_151 = arith.constant 1 : index
    %c0_152 = arith.constant 0 : index
    %c0_153 = arith.constant 0 : index
    %201 = vector.load %arg6[%c2_150, %c1_151, %c0_152, %c0_153] : memref<3x3x64x64xbf16, #tpu.memory_space<vmem>>, vector<1x1x64x64xbf16>
    %202 = vector.shape_cast %201 : vector<1x1x64x64xbf16> to vector<64x64xbf16>
    %cst_154 = arith.constant dense<0.000000e+00> : vector<16x64xf32>
    %203 = tpu.matmul %200, %202, %cst_154 {dimension_numbers = #tpu.dot_dimension_numbers<[1], [0], [0], [1], [0, 0, 1, 1], [], []>} : vector<16x64xbf16>, vector<64x64xbf16>, vector<16x64xf32> -> vector<16x64xf32>
    %204 = arith.addf %199, %203 : vector<16x64xf32>
    %205 = arith.truncf %195 : vector<16x64xf32> to vector<16x64xbf16>
    %c2_155 = arith.constant 2 : index
    %c2_156 = arith.constant 2 : index
    %c0_157 = arith.constant 0 : index
    %c0_158 = arith.constant 0 : index
    %206 = vector.load %arg6[%c2_155, %c2_156, %c0_157, %c0_158] : memref<3x3x64x64xbf16, #tpu.memory_space<vmem>>, vector<1x1x64x64xbf16>
    %207 = vector.shape_cast %206 : vector<1x1x64x64xbf16> to vector<64x64xbf16>
    %cst_159 = arith.constant dense<0.000000e+00> : vector<16x64xf32>
    %208 = tpu.matmul %205, %207, %cst_159 {dimension_numbers = #tpu.dot_dimension_numbers<[1], [0], [0], [1], [0, 0, 1, 1], [], []>} : vector<16x64xbf16>, vector<64x64xbf16>, vector<16x64xf32> -> vector<16x64xf32>
    %209 = arith.addf %204, %208 : vector<16x64xf32>
    %c2_160 = arith.constant 2 : index
    %c0_161 = arith.constant 0 : index
    %c0_162 = arith.constant 0 : index
    %210 = vector.load %arg7[%c2_160, %c0_161, %c0_162] : memref<3x1x64xf32, #tpu.memory_space<vmem>>, vector<1x1x64xf32>
    %211 = vector.shape_cast %210 : vector<1x1x64xf32> to vector<1x64xf32>
    %c2_163 = arith.constant 2 : index
    %c0_164 = arith.constant 0 : index
    %c0_165 = arith.constant 0 : index
    %212 = vector.load %arg8[%c2_163, %c0_164, %c0_165] : memref<3x1x64xf32, #tpu.memory_space<vmem>>, vector<1x1x64xf32>
    %213 = vector.shape_cast %212 : vector<1x1x64xf32> to vector<1x64xf32>
    %214 = vector.broadcast %211 : vector<1x64xf32> to vector<16x64xf32>
    %215 = arith.mulf %209, %214 : vector<16x64xf32>
    %216 = vector.broadcast %213 : vector<1x64xf32> to vector<16x64xf32>
    %217 = arith.addf %215, %216 : vector<16x64xf32>
    %cst_166 = arith.constant 0.000000e+00 : f32
    %218 = vector.broadcast %cst_166 : f32 to vector<16x64xf32>
    %219 = arith.maximumf %217, %218 : vector<16x64xf32>
    %220 = vector.extract_strided_slice %219 {offsets = [0, 0], sizes = [15, 64], strides = [1, 1]} : vector<16x64xf32> to vector<15x64xf32>
    %221 = tpu.concatenate %0, %220 in 0 : vector<1x64xf32>, vector<15x64xf32> -> vector<16x64xf32>
    %222 = vector.extract_strided_slice %219 {offsets = [1, 0], sizes = [15, 64], strides = [1, 1]} : vector<16x64xf32> to vector<15x64xf32>
    %223 = tpu.concatenate %222, %0 in 0 : vector<15x64xf32>, vector<1x64xf32> -> vector<16x64xf32>
    %224 = arith.truncf %221 : vector<16x64xf32> to vector<16x64xbf16>
    %c2_167 = arith.constant 2 : index
    %c0_168 = arith.constant 0 : index
    %c0_169 = arith.constant 0 : index
    %c0_170 = arith.constant 0 : index
    %225 = vector.load %arg9[%c2_167, %c0_168, %c0_169, %c0_170] : memref<3x3x64x64xbf16, #tpu.memory_space<vmem>>, vector<1x1x64x64xbf16>
    %226 = vector.shape_cast %225 : vector<1x1x64x64xbf16> to vector<64x64xbf16>
    %cst_171 = arith.constant dense<0.000000e+00> : vector<16x64xf32>
    %227 = tpu.matmul %224, %226, %cst_171 {dimension_numbers = #tpu.dot_dimension_numbers<[1], [0], [0], [1], [0, 0, 1, 1], [], []>} : vector<16x64xbf16>, vector<64x64xbf16>, vector<16x64xf32> -> vector<16x64xf32>
    %228 = arith.truncf %219 : vector<16x64xf32> to vector<16x64xbf16>
    %c2_172 = arith.constant 2 : index
    %c1_173 = arith.constant 1 : index
    %c0_174 = arith.constant 0 : index
    %c0_175 = arith.constant 0 : index
    %229 = vector.load %arg9[%c2_172, %c1_173, %c0_174, %c0_175] : memref<3x3x64x64xbf16, #tpu.memory_space<vmem>>, vector<1x1x64x64xbf16>
    %230 = vector.shape_cast %229 : vector<1x1x64x64xbf16> to vector<64x64xbf16>
    %cst_176 = arith.constant dense<0.000000e+00> : vector<16x64xf32>
    %231 = tpu.matmul %228, %230, %cst_176 {dimension_numbers = #tpu.dot_dimension_numbers<[1], [0], [0], [1], [0, 0, 1, 1], [], []>} : vector<16x64xbf16>, vector<64x64xbf16>, vector<16x64xf32> -> vector<16x64xf32>
    %232 = arith.addf %227, %231 : vector<16x64xf32>
    %233 = arith.truncf %223 : vector<16x64xf32> to vector<16x64xbf16>
    %c2_177 = arith.constant 2 : index
    %c2_178 = arith.constant 2 : index
    %c0_179 = arith.constant 0 : index
    %c0_180 = arith.constant 0 : index
    %234 = vector.load %arg9[%c2_177, %c2_178, %c0_179, %c0_180] : memref<3x3x64x64xbf16, #tpu.memory_space<vmem>>, vector<1x1x64x64xbf16>
    %235 = vector.shape_cast %234 : vector<1x1x64x64xbf16> to vector<64x64xbf16>
    %cst_181 = arith.constant dense<0.000000e+00> : vector<16x64xf32>
    %236 = tpu.matmul %233, %235, %cst_181 {dimension_numbers = #tpu.dot_dimension_numbers<[1], [0], [0], [1], [0, 0, 1, 1], [], []>} : vector<16x64xbf16>, vector<64x64xbf16>, vector<16x64xf32> -> vector<16x64xf32>
    %237 = arith.addf %232, %236 : vector<16x64xf32>
    %238 = arith.addf %237, %166 : vector<16x64xf32>
    %c4 = arith.constant 4 : index
    %c0_182 = arith.constant 0 : index
    %c0_183 = arith.constant 0 : index
    %239 = vector.load %arg10[%c4, %c0_182, %c0_183] : memref<5x1x64xf32, #tpu.memory_space<vmem>>, vector<1x1x64xf32>
    %240 = vector.shape_cast %239 : vector<1x1x64xf32> to vector<1x64xf32>
    %c4_184 = arith.constant 4 : index
    %c0_185 = arith.constant 0 : index
    %c0_186 = arith.constant 0 : index
    %241 = vector.load %arg11[%c4_184, %c0_185, %c0_186] : memref<5x1x64xf32, #tpu.memory_space<vmem>>, vector<1x1x64xf32>
    %242 = vector.shape_cast %241 : vector<1x1x64xf32> to vector<1x64xf32>
    %243 = vector.broadcast %240 : vector<1x64xf32> to vector<16x64xf32>
    %244 = arith.mulf %238, %243 : vector<16x64xf32>
    %245 = vector.broadcast %242 : vector<1x64xf32> to vector<16x64xf32>
    %246 = arith.addf %244, %245 : vector<16x64xf32>
    %cst_187 = arith.constant 0.000000e+00 : f32
    %247 = vector.broadcast %cst_187 : f32 to vector<16x64xf32>
    %248 = arith.maximumf %246, %247 : vector<16x64xf32>
    %249 = arith.truncf %248 : vector<16x64xf32> to vector<16x64xbf16>
    %c4_188 = arith.constant 4 : index
    %c0_189 = arith.constant 0 : index
    %c0_190 = arith.constant 0 : index
    %250 = vector.load %arg12[%c4_188, %c0_189, %c0_190] : memref<5x64x64xbf16, #tpu.memory_space<vmem>>, vector<1x64x64xbf16>
    %251 = vector.shape_cast %250 : vector<1x64x64xbf16> to vector<64x64xbf16>
    %cst_191 = arith.constant dense<0.000000e+00> : vector<16x64xf32>
    %252 = tpu.matmul %249, %251, %cst_191 {dimension_numbers = #tpu.dot_dimension_numbers<[1], [0], [0], [1], [0, 0, 1, 1], [], []>} : vector<16x64xbf16>, vector<64x64xbf16>, vector<16x64xf32> -> vector<16x64xf32>
    %253 = arith.addf %181, %252 : vector<16x64xf32>
    %c0_192 = arith.constant 0 : index
    %c0_193 = arith.constant 0 : index
    %c0_194 = arith.constant 0 : index
    %254 = vector.load %arg13[%c0_192, %c0_193, %c0_194] : memref<1x16x64xf32, #tpu.memory_space<vmem>>, vector<1x16x64xf32>
    %255 = vector.shape_cast %254 : vector<1x16x64xf32> to vector<16x64xf32>
    %256 = vector.shape_cast %253 : vector<16x64xf32> to vector<1x16x64xf32>
    tpu.vector_store %arg13[%c0_192, %c0_193, %c0_194], %256 {strides = array<i32>} : memref<1x16x64xf32, #tpu.memory_space<vmem>>, vector<1x16x64xf32>,
    return
  }
  func.func @transform_0(%arg0: i32) -> (i32, i32, i32) {
    %c0_i32 = arith.constant 0 : i32
    %c0_i32_0 = arith.constant 0 : i32
    %c0_i32_1 = arith.constant 0 : i32
    return %arg0, %c0_i32, %c0_i32_0 : i32, i32, i32
  }
  func.func @transform_1(%arg0: i32) -> (i32, i32, i32) {
    %c0_i32 = arith.constant 0 : i32
    %c0_i32_0 = arith.constant 0 : i32
    %c0_i32_1 = arith.constant 0 : i32
    return %arg0, %c0_i32, %c0_i32_0 : i32, i32, i32
  }
  func.func @transform_2(%arg0: i32) -> (i32, i32, i32) {
    %c0_i32 = arith.constant 0 : i32
    %c0_i32_0 = arith.constant 0 : i32
    %c0_i32_1 = arith.constant 0 : i32
    return %arg0, %c0_i32, %c0_i32_0 : i32, i32, i32
  }
  func.func @transform_3(%arg0: i32) -> (i32, i32, i32) {
    %c0_i32 = arith.constant 0 : i32
    %c0_i32_0 = arith.constant 0 : i32
    %c0_i32_1 = arith.constant 0 : i32
    %c0_i32_2 = arith.constant 0 : i32
    return %c0_i32, %c0_i32_0, %c0_i32_1 : i32, i32, i32
  }
  func.func @transform_4(%arg0: i32) -> (i32, i32, i32) {
    %c0_i32 = arith.constant 0 : i32
    %c0_i32_0 = arith.constant 0 : i32
    %c0_i32_1 = arith.constant 0 : i32
    %c0_i32_2 = arith.constant 0 : i32
    return %c0_i32, %c0_i32_0, %c0_i32_1 : i32, i32, i32
  }
  func.func @transform_5(%arg0: i32) -> (i32, i32, i32, i32) {
    %c0_i32 = arith.constant 0 : i32
    %c0_i32_0 = arith.constant 0 : i32
    %c0_i32_1 = arith.constant 0 : i32
    %c0_i32_2 = arith.constant 0 : i32
    %c0_i32_3 = arith.constant 0 : i32
    return %c0_i32, %c0_i32_0, %c0_i32_1, %c0_i32_2 : i32, i32, i32, i32
  }
  func.func @transform_6(%arg0: i32) -> (i32, i32, i32) {
    %c0_i32 = arith.constant 0 : i32
    %c0_i32_0 = arith.constant 0 : i32
    %c0_i32_1 = arith.constant 0 : i32
    %c0_i32_2 = arith.constant 0 : i32
    return %c0_i32, %c0_i32_0, %c0_i32_1 : i32, i32, i32
  }
  func.func @transform_7(%arg0: i32) -> (i32, i32, i32) {
    %c0_i32 = arith.constant 0 : i32
    %c0_i32_0 = arith.constant 0 : i32
    %c0_i32_1 = arith.constant 0 : i32
    %c0_i32_2 = arith.constant 0 : i32
    return %c0_i32, %c0_i32_0, %c0_i32_1 : i32, i32, i32
  }
  func.func @transform_8(%arg0: i32) -> (i32, i32, i32, i32) {
    %c0_i32 = arith.constant 0 : i32
    %c0_i32_0 = arith.constant 0 : i32
    %c0_i32_1 = arith.constant 0 : i32
    %c0_i32_2 = arith.constant 0 : i32
    %c0_i32_3 = arith.constant 0 : i32
    return %c0_i32, %c0_i32_0, %c0_i32_1, %c0_i32_2 : i32, i32, i32, i32
  }
  func.func @transform_9(%arg0: i32) -> (i32, i32, i32) {
    %c0_i32 = arith.constant 0 : i32
    %c0_i32_0 = arith.constant 0 : i32
    %c0_i32_1 = arith.constant 0 : i32
    %c0_i32_2 = arith.constant 0 : i32
    return %c0_i32, %c0_i32_0, %c0_i32_1 : i32, i32, i32
  }
  func.func @transform_10(%arg0: i32) -> (i32, i32, i32) {
    %c0_i32 = arith.constant 0 : i32
    %c0_i32_0 = arith.constant 0 : i32
    %c0_i32_1 = arith.constant 0 : i32
    %c0_i32_2 = arith.constant 0 : i32
    return %c0_i32, %c0_i32_0, %c0_i32_1 : i32, i32, i32
  }
  func.func @transform_11(%arg0: i32) -> (i32, i32, i32) {
    %c0_i32 = arith.constant 0 : i32
    %c0_i32_0 = arith.constant 0 : i32
    %c0_i32_1 = arith.constant 0 : i32
    %c0_i32_2 = arith.constant 0 : i32
    return %c0_i32, %c0_i32_0, %c0_i32_1 : i32, i32, i32
  }
  func.func @transform_12(%arg0: i32) -> (i32, i32, i32) {
    %c0_i32 = arith.constant 0 : i32
    %c0_i32_0 = arith.constant 0 : i32
    %c0_i32_1 = arith.constant 0 : i32
    return %arg0, %c0_i32, %c0_i32_0 : i32, i32, i32
  }
}

</mosaic_0001>

<bundles_post_ra>
// kernel: tpu_custom_call.1
= control target key start
LH: loop header
LB: loop body
LE: loop exit
PB: predicated region body
PF: predicated region fallthrough
CT: control target
= control target key end

     0   :  { %s4729_s0 = inlined_call_operand.hbm [shape: f32[2,16,64], index: 0, kind: input, shape index: {}]   ;;  %s4730_s1 = inlined_call_operand.hbm [shape: f32[2,16,64], index: 1, kind: input, shape index: {}]   ;;  %s4731_s2 = inlined_call_operand.hbm [shape: f32[2,16,64], index: 2, kind: input, shape index: {}]   ;;  %s4732_s3 = inlined_call_operand.hbm [shape: f32[3,1,64], index: 3, kind: input, shape index: {}]   ;;  %s4733_s4 = inlined_call_operand.vmem [shape: f32[3,1,64], index: 4, kind: input, shape index: {}]   ;;  %s4734_s5 = inlined_call_operand.hbm [shape: bf16[3,3,64,64], index: 5, kind: input, shape index: {}]   ;;  %s4735_s6 = inlined_call_operand.vmem [shape: f32[3,1,64], index: 6, kind: input, shape index: {}]   ;;  %s4736_s7 = inlined_call_operand.vmem [shape: f32[3,1,64], index: 7, kind: input, shape index: {}]   ;;  %s4737_s8 = inlined_call_operand.hbm [shape: bf16[3,3,64,64], index: 8, kind: input, shape index: {}]   ;;  %s4738_s9 = inlined_call_operand.vmem [shape: f32[5,1,64], index: 9, kind: input, shape index: {}]   ;;  %s4739_s10 = inlined_call_operand.vmem [shape: f32[5,1,64], index: 10, kind: input, shape index: {}]   ;;  %s4740_s11 = inlined_call_operand.hbm [shape: bf16[5,64,64], index: 11, kind: input, shape index: {}]   ;;  %s4741_s12 = inlined_call_operand.hbm [shape: f32[2,16,64], index: 12, kind: output, shape index: {}]  }
   0x1   :  { %4775 = sst [smem:[#allocation26_spill]] %s4730_s1 }
   0x2   :  { %4776 = sst [smem:[#allocation27_spill]] %s4732_s3 }
   0x3   :  { %4777 = sst [smem:[#allocation28_spill]] %s4735_s6 }
   0x4   :  { %4778 = sst [smem:[#allocation29_spill]] %s4736_s7 }
   0x5   :  { %4779 = sst [smem:[#allocation30_spill]] %s4737_s8 }
   0x6   :  { %4780 = sst [smem:[#allocation31_spill]] %s4738_s9 }
   0x7   :  { %4781 = sst [smem:[#allocation32_spill]] %s4739_s10 }
   0x8   :  { %4782 = sst [smem:[#allocation33_spill]] %s4741_s12 }
   0x9   :  { %17 = vsyncpa [#allocation3], 0 }
   0xa   :  { %19 = vsyncpa [#allocation3 + $0x1], 0 }
   0xb   :  { %20 = vsyncpa [#allocation6], 0 }
   0xc   :  { %22 = vsyncpa [#allocation6 + $0x1], 0 }
   0xd   :  { %23 = vsyncpa [#allocation9], 0 }
   0xe   :  { %24 = vsyncpa [#allocation12], 0 }
   0xf   :  { %25 = vsyncpa [#allocation4], 0 }
  0x10   :  { %27 = vsyncpa [#allocation4 + $0x1], 0  ;;  %s4062_s21 = smov 0   ;;  %s4064_s22 = smov 0  }
  0x11   :  { %s4066_s23 = smov 0   ;;  %s4068_s24 = smov 0  }
  0x12 LB: > { %4783 = sst [smem:[#allocation20_spill]] %s3965_s21  ;;  %s4083_s25 = sadd.s32 4294967295, %s3977_s24   ;;  %s3977_s24 = sphi %s4068_s24, %s4829_s24   ;;  %s3973_s23 = sphi %s4066_s23, %s4833_s23   ;;  %s3969_s22 = sphi %s4064_s22, %s4832_s22   ;;  %s3965_s21 = sphi %s4062_s21, %s4831_s21  }
  0x13   : > { %4784 = sst [smem:[#allocation21_spill]] %s3977_s24  ;;  %s2882_s26 = sadd.s32 4294967294, %s3977_s24  }
  0x14   : > { %p53_p0 = scmp.ne.s32.totalorder %s3969_s22, %s3965_s21  ;;  %p4744_p1 = scmp.eq.s32.totalorder %s4083_s25, 0 }
  0x15   : > { %p324_p3 = scmp.eq.s32.totalorder %s2882_s26, 1  ;;  %p2883_p5 = scmp.ge.s32.totalorder %s3977_s24, 1 }
  0x16   : > { %p4092_p4 = por %p4744_p1, %p53_p0  ;;  %p331_p7 = scmp.lt.s32.totalorder %s3977_s24, 3 }
  0x17   : > { %p4097_p6 = por %p324_p3, %p53_p0  ;;  %s3979_s30 = smov [#allocation8]  }
  0x18   : > { %s4785_s27 = scalar_select %p4092_p4, 1, 0 }
  0x19   : > { %s4786_s28 = scalar_select %p4097_p6, 1, 0 }
  0x1a   : > { %p4102_p8 = pnand %p2883_p5, %p331_p7  ;;  %s343_s13 = sshll.u32 %s3979_s30, 4  ;;  %s4106_s13 = int_to_ptr.vmem [resolvable:$true] %s343_s13 }
  0x1b   : > { %4787 = sst [smem:[#allocation22_spill]] %s4786_s28  ;;  %s3980_s15 = smov [#allocation11]  }
  0x1c   : > { %s4788_s29 = scalar_select %p4102_p8, 1, 0 }
  0x1d   : > { %p3522_p9 = pneg %p4102_p8  ;;  %s378_s16 = sshll.u32 %s3980_s15, 4  ;;  %s379_s16 = int_to_ptr.vmem [resolvable:$true] %s378_s16 }
  0x1e   : > { %s4790_s3 = sld [smem:[#allocation27_spill]] }
  0x1f   : > { %p4113_p11 = pnand %p3522_p9, %p4744_p1 }
  0x21   : > { %s4789_s14 = scalar_select %p4113_p11, 1, 0 }
  0x22   : > { %p4125_p13 = pneg %p4113_p11 }
  0x24   : > { %s3697_s19 = scalar_lea.hbm %s4790_s3, 48 }
  0x25   : > { %p3698_p12 = scmp.ne.s32.totalorder %s4790_s3, %s3697_s19  ;;  %p3704_p5 = scmp.lt.u32.totalorder %s3697_s19, %s4790_s3 }
  0x26   : > { %s4791_s30 = scalar_select %p4125_p13, 1, 0 }
  0x27   : > { %p3700_p0 = pnand %p4125_p13, %p3698_p12 }
  0x29   : > { %p3701_p3 = pneg %p3700_p0 }
  0x2b   : > { %p3706_p7 = pnand %p3704_p5, %p3701_p3 }
  0x2d   : > { %3709 = shalt.err (!%p3706_p7)
}
  0x2e   : > { %s3710_s15 = scalar_lea.vmem %s4106_s13, 48  ;;  %s3717_s17 = scalar_lea.vmem %s4106_s13, 64 }
  0x2f   : > { %p3711_p9 = scmp.ne.s32.totalorder %s4106_s13, %s3710_s15  ;;  %p3718_p12 = scmp.lt.s32.totalorder %s4106_s13, %s4106_s13 }
  0x30   : > { %p3719_p0 = scmp.lt.s32.totalorder %s3717_s17, %s3710_s15 }
  0x31   : > { %p3713_p10 = pnand %p3711_p9, %p4125_p13 }
  0x32   : > { %p3720_p2 = por %p3719_p0, %p3718_p12 }
  0x33   : > { %p3714_p1 = pneg %p3713_p10 }
  0x35   : > { %p3721_p6 = pnand %p3720_p2, %p3714_p1 }
  0x37   : > { %3724 = shalt.err (!%p3721_p6)
}
  0x38   : > { %s3981_s21 = smov 16   ;;  %s3982_s28 = smov 1  }
  0x39   : > { %3525 = dma.hbm_to_vmem [thread:$0]  (!%p4113_p11), %s4790_s3, 48, %s4106_s13, [#allocation9], %s3981_s21, %s3981_s21, %s3982_s28  }
  0x3a   : > { %s4792_s8 = sld [smem:[#allocation30_spill]] }
  0x40   : > { %s3725_s12 = scalar_lea.hbm %s4792_s8, 4608 }
  0x41   : > { %p3726_p1 = scmp.ne.s32.totalorder %s4792_s8, %s3725_s12  ;;  %p3732_p10 = scmp.lt.u32.totalorder %s3725_s12, %s4792_s8 }
  0x43   : > { %p3728_p2 = pnand %p3726_p1, %p4125_p13 }
  0x45   : > { %p3729_p6 = pneg %p3728_p2 }
  0x47   : > { %p3734_p3 = pnand %p3732_p10, %p3729_p6 }
  0x49   : > { %3737 = shalt.err (!%p3734_p3)
}
  0x4a   : > { %s3738_s18 = scalar_lea.vmem %s379_s16, 4608  ;;  %p3746_p12 = scmp.lt.s32.totalorder %s379_s16, %s379_s16 }
  0x4b   : > { %p3739_p5 = scmp.ne.s32.totalorder %s379_s16, %s3738_s18  ;;  %p3747_p0 = scmp.lt.s32.totalorder %s3738_s18, %s3738_s18 }
  0x4d   : > { %p3741_p7 = pnand %p3739_p5, %p4125_p13  ;;  %p3748_p4 = por %p3747_p0, %p3746_p12 }
  0x4f   : > { %p3742_p9 = pneg %p3741_p7 }
  0x51   : > { %p3749_p8 = pnand %p3748_p4, %p3742_p9 }
  0x53   : > { %3752 = shalt.err (!%p3749_p8)
}
  0x54   : > { %s4751_s7 = smov 64   ;;  %s4753_s6 = smov 4  }
  0x55   : > { %3531 = dma.hbm_to_vmem [thread:$0]  (!%p4113_p11), %s4792_s8, 4608, %s379_s16, [#allocation12], %s4751_s7, %s4751_s7, %s4753_s6  }
  0x56   : > { %s4169_s21 = sadd.s32 1, %s3977_s24   ;;  %s40_s28 = sadd.s32 1, %s3973_s23 }
  0x57   : > { %4793 = sst [smem:[#allocation23_spill]] %s4169_s21  ;;  %s37_s19 = ssub.s32 %s3977_s24, %s4169_s21 }
  0x58   : > { %p47_p4 = scmp.ne.s32.totalorder %s3973_s23, %s3969_s22  ;;  %p38_p8 = scmp.eq.s32.totalorder %s37_s19, 0 }
  0x59   : > { %p48_p1 = scmp.eq.s32.totalorder %s3977_s24, 0  ;;  %p4794_p2 = scmp.eq.s32.totalorder %s4083_s25, 1 }
  0x5a   : > { %p3553_p10 = scmp.lt.s32.totalorder %s3977_s24, 2  ;;  %s4750_s15 = sand.u32 1, %s3973_s23  }
  0x5b   : > { %p4179_p6 = por %p4794_p2, %p47_p4  ;;  %p49_p3 = por %p48_p1, %p47_p4 }
  0x5c   : > { %s4185_s26 = scalar_select %p38_p8, %s3973_s23, %s40_s28  }
  0x5d   : > { %s4795_s20 = scalar_select %p4179_p6, 1, 0 }
  0x5e   : > { %4797 = sst [smem:[#allocation25_spill]] %s4185_s26  ;;  %s4190_s16 = sshll.u32 %s4750_s15, 4 }
  0x5f   : > { %4796 = sst [smem:[#allocation24_spill]] %s4795_s20  ;;  %s4193_s17 = sshll.u32 %s3977_s24, 8 }
  0x60   : > { %p4195_p5 = pnand %p3553_p10, %p49_p3  ;;  %s432_s12 = sand.u32 1, %s3977_s24  }
  0x61   : > { %s4799_s1 = sld [smem:[#allocation26_spill]]  ;;  %s436_s15 = scalar_lea.vmem [#allocation5], %s4190_s16 }
  0x62   : > { %s4798_s18 = scalar_select %p4195_p5, 1, 0 }
  0x63   : > { %s443_s7 = sshll.u32 %s436_s15, 4  ;;  %s3985_s6 = smov [#allocation10]   ;;  %s4207_s7 = int_to_ptr.vmem [resolvable:$true] %s443_s7 }
  0x64   : > { %s4209_s3 = sshll.u32 %s3985_s6, 4  ;;  %s4211_s8 = scalar_lea.sflag [#allocation6], %s432_s12  ;;  %s360_s3 = int_to_ptr.vmem [resolvable:$true] %s4209_s3 }
  0x65   : > { %p4217_p9 = pneg %p4195_p5 }
  0x67   : > { %s4204_s28 = scalar_lea.hbm %s4799_s1, %s4193_s17  ;;  %s3758_s21 = scalar_lea.hbm %s4799_s1, 512 }
  0x68   : > { %s3753_s26 = scalar_lea.hbm %s4204_s28, 256  ;;  %p3759_p4 = scmp.lt.u32.totalorder %s4204_s28, %s4799_s1 }
  0x69   : > { %p3754_p7 = scmp.ne.s32.totalorder %s4204_s28, %s3753_s26  ;;  %p3760_p8 = scmp.lt.u32.totalorder %s3758_s21, %s3753_s26 }
  0x6a   : > { %s4800_s13 = scalar_select %p4217_p9, 1, 0 }
  0x6b   : > { %p3756_p12 = pnand %p4217_p9, %p3754_p7  ;;  %p3761_p1 = por %p3760_p8, %p3759_p4 }
  0x6c   : > { %p3762_p2 = scmp.lt.u32.totalorder %s3753_s26, %s4204_s28 }
  0x6d   : > { %p3757_p0 = pneg %p3756_p12 }
  0x6e   : > { %p3763_p10 = por %p3762_p2, %p3761_p1 }
  0x70   : > { %p3764_p3 = pnand %p3763_p10, %p3757_p0 }
  0x72   : > { %3767 = shalt.err (!%p3764_p3)
}
  0x73   : > { %s3768_s12 = scalar_lea.vmem %s4207_s7, 256  ;;  %s3986_s19 = smov [#allocation5]  }
  0x74   : > { %p3769_p7 = scmp.ne.s32.totalorder %s4207_s7, %s3768_s12  ;;  %s3773_s15 = sshll.u32 %s3986_s19, 4  ;;  %s3774_s15 = int_to_ptr.vmem [resolvable:$false] %s3773_s15 }
  0x75   : > { %s3775_s24 = scalar_lea.vmem %s3774_s15, 512  ;;  %p3776_p11 = scmp.lt.s32.totalorder %s4207_s7, %s3774_s15 }
  0x76   : > { %p3771_p12 = pnand %p3769_p7, %p4217_p9  ;;  %p3777_p13 = scmp.lt.s32.totalorder %s3775_s24, %s3768_s12 }
  0x78   : > { %p3772_p6 = pneg %p3771_p12  ;;  %p3778_p4 = por %p3777_p13, %p3776_p11 }
  0x7a   : > { %p3779_p8 = pnand %p3778_p4, %p3772_p6 }
  0x7c   : > { %3782 = shalt.err (!%p3779_p8)
}
  0x7d   : > { %s4768_s21 = smov 128   ;;  %s4770_s26 = smov 8  }
  0x7e   : > { %3541 = dma.hbm_to_vmem [thread:$0]  (!%p4195_p5), %s4204_s28, 256, %s4207_s7, %s4211_s8, %s4768_s21, %s4768_s21, %s4770_s26  }
  0x7f   : > { %s3783_s12 = scalar_lea.hbm %s4734_s5, 4608  ;;  %p4801_p13 = scmp.ne.s32.totalorder %s4791_s30, 0 }
  0x80   : > { %p3784_p11 = scmp.ne.s32.totalorder %s4734_s5, %s3783_s12  ;;  %p3790_p1 = scmp.lt.u32.totalorder %s3783_s12, %s4734_s5 }
  0x82   : > { %p3786_p6 = pnand %p3784_p11, %p4801_p13 }
  0x84   : > { %p3787_p0 = pneg %p3786_p6 }
  0x86   : > { %p3792_p2 = pnand %p3790_p1, %p3787_p0 }
  0x88   : > { %3795 = shalt.err (!%p3792_p2)
}
  0x89   : > { %s3796_s10 = scalar_lea.vmem %s360_s3, 4608  ;;  %p3804_p12 = scmp.lt.s32.totalorder %s360_s3, %s360_s3 }
  0x8a   : > { %p3797_p10 = scmp.ne.s32.totalorder %s360_s3, %s3796_s10  ;;  %p3805_p4 = scmp.lt.s32.totalorder %s3796_s10, %s3796_s10 }
  0x8c   : > { %p3799_p3 = pnand %p3797_p10, %p4801_p13  ;;  %p3806_p8 = por %p3805_p4, %p3804_p12 }
  0x8e   : > { %p3800_p7 = pneg %p3799_p3 }
  0x90   : > { %p3807_p5 = pnand %p3806_p8, %p3800_p7 }
  0x92   : > { %3810 = shalt.err (!%p3807_p5)
}
  0x93   : > { %p4802_p11 = scmp.ne.s32.totalorder %s4789_s14, 0  ;;  %s4803_s7 = smov 4  }
  0x94   : > { %s4804_s28 = smov 64   ;;  %s3989_s6 = smov [#allocation13]  }
  0x95   : > { %3528 = dma.hbm_to_vmem [thread:$0]  (!%p4802_p11), %s4734_s5, 4608, %s360_s3, [#allocation9], %s4804_s28, %s4804_s28, %s4803_s7  }
  0x96   : > { %s397_s19 = sshll.u32 %s3989_s6, 4  ;;  %s3811_s10 = scalar_lea.hbm %s4740_s11, 2560  ;;  %s398_s19 = int_to_ptr.vmem [resolvable:$true] %s397_s19 }
  0x97   : > { %p3812_p5 = scmp.ne.s32.totalorder %s4740_s11, %s3811_s10  ;;  %p3818_p1 = scmp.lt.u32.totalorder %s3811_s10, %s4740_s11 }
  0x99   : > { %p3814_p6 = pnand %p3812_p5, %p4801_p13 }
  0x9b   : > { %p3815_p0 = pneg %p3814_p6 }
  0x9d   : > { %p3820_p2 = pnand %p3818_p1, %p3815_p0 }
  0x9f   : > { %3823 = shalt.err (!%p3820_p2)
}
  0xa0   : > { %s3824_s3 = scalar_lea.vmem %s398_s19, 2560  ;;  %p3832_p12 = scmp.lt.s32.totalorder %s398_s19, %s398_s19 }
  0xa1   : > { %p3825_p10 = scmp.ne.s32.totalorder %s398_s19, %s3824_s3  ;;  %p3833_p4 = scmp.lt.s32.totalorder %s3824_s3, %s3824_s3 }
  0xa3   : > { %p3827_p3 = pnand %p3825_p10, %p4801_p13  ;;  %p3834_p8 = por %p3833_p4, %p3832_p12 }
  0xa5   : > { %p3828_p7 = pneg %p3827_p3 }
  0xa7   : > { %p3835_p9 = pnand %p3834_p8, %p3828_p7 }
  0xa9   : > { %3838 = shalt.err (!%p3835_p9)
}
  0xaa   : > { %3534 = dma.hbm_to_vmem [thread:$0]  (!%p4802_p11), %s4740_s11, 2560, %s398_s19, [#allocation12], %s4804_s28, %s4804_s28, %s4803_s7  }
  0xab   : > { %s4291_s1 = scalar_lea.hbm %s4729_s0, %s4193_s17  ;;  %s415_s14 = scalar_lea.vmem [#allocation2], %s4190_s16 }
  0xac   : > { %s422_s20 = sshll.u32 %s415_s14, 4  ;;  %s4805_s6 = sand.u32 1, %s3973_s23   ;;  %s4294_s20 = int_to_ptr.vmem [resolvable:$true] %s422_s20 }
  0xad   : > { %s4298_s12 = scalar_lea.sflag [#allocation3], %s4805_s6  ;;  %s3839_s15 = scalar_lea.hbm %s4291_s1, 256 }
  0xae   : > { %p3840_p9 = scmp.ne.s32.totalorder %s4291_s1, %s3839_s15  ;;  %p4806_p13 = scmp.ne.s32.totalorder %s4800_s13, 0 }
  0xaf   : > { %s3844_s19 = scalar_lea.hbm %s4729_s0, 512  ;;  %p3845_p6 = scmp.lt.u32.totalorder %s4291_s1, %s4729_s0 }
  0xb0   : > { %p3842_p11 = pnand %p3840_p9, %p4806_p13  ;;  %p3846_p0 = scmp.lt.u32.totalorder %s3844_s19, %s3839_s15 }
  0xb1   : > { %p3848_p2 = scmp.lt.u32.totalorder %s3839_s15, %s4291_s1 }
  0xb2   : > { %p3843_p5 = pneg %p3842_p11  ;;  %p3847_p1 = por %p3846_p0, %p3845_p6 }
  0xb4   : > { %p3849_p10 = por %p3848_p2, %p3847_p1 }
  0xb6   : > { %p3850_p3 = pnand %p3849_p10, %p3843_p5 }
  0xb8   : > { %3853 = shalt.err (!%p3850_p3)
}
  0xb9   : > { %s3854_s3 = scalar_lea.vmem %s4294_s20, 256  ;;  %s3990_s9 = smov [#allocation2]  }
  0xba   : > { %p3855_p7 = scmp.ne.s32.totalorder %s4294_s20, %s3854_s3  ;;  %s3859_s21 = sshll.u32 %s3990_s9, 4  ;;  %s3860_s21 = int_to_ptr.vmem [resolvable:$false] %s3859_s21 }
  0xbb   : > { %s3861_s30 = scalar_lea.vmem %s3860_s21, 512  ;;  %p3862_p8 = scmp.lt.s32.totalorder %s4294_s20, %s3860_s21 }
  0xbc   : > { %p3857_p12 = pnand %p3855_p7, %p4806_p13  ;;  %p3863_p9 = scmp.lt.s32.totalorder %s3861_s30, %s3854_s3 }
  0xbe   : > { %p3858_p4 = pneg %p3857_p12  ;;  %p3864_p11 = por %p3863_p9, %p3862_p8 }
  0xc0   : > { %p3865_p6 = pnand %p3864_p11, %p3858_p4 }
  0xc2   : > { %3868 = shalt.err (!%p3865_p6)
}
  0xc3   : > { %p4807_p5 = scmp.ne.s32.totalorder %s4798_s18, 0  ;;  %s4808_s26 = smov 8  }
  0xc4   : > { %s4809_s14 = smov 128   ;;  %s4329_s7 = scalar_lea.hbm %s4731_s2, %s4193_s17 }
  0xc5   : > { %3538 = dma.hbm_to_vmem [thread:$0]  (!%p4807_p5), %s4291_s1, 256, %s4294_s20, %s4298_s12, %s4809_s14, %s4809_s14, %s4808_s26  }
  0xc6   : > { %s457_s28 = scalar_lea.vmem [#allocation7], %s4190_s16  ;;  %s3869_s10 = scalar_lea.hbm %s4329_s7, 256 }
  0xc7   : > { %s464_s19 = sshll.u32 %s457_s28, 4  ;;  %p3870_p0 = scmp.ne.s32.totalorder %s4329_s7, %s3869_s10  ;;  %s4332_s19 = int_to_ptr.vmem [resolvable:$true] %s464_s19 }
  0xc8   : > { %s3874_s20 = scalar_lea.hbm %s4731_s2, 512  ;;  %p3875_p10 = scmp.lt.u32.totalorder %s4329_s7, %s4731_s2 }
  0xc9   : > { %p3872_p1 = pnand %p3870_p0, %p4806_p13  ;;  %p3876_p3 = scmp.lt.u32.totalorder %s3874_s20, %s3869_s10 }
  0xca   : > { %p3878_p12 = scmp.lt.u32.totalorder %s3869_s10, %s4329_s7 }
  0xcb   : > { %p3873_p2 = pneg %p3872_p1  ;;  %p3877_p7 = por %p3876_p3, %p3875_p10 }
  0xcd   : > { %p3879_p4 = por %p3878_p12, %p3877_p7 }
  0xcf   : > { %p3880_p8 = pnand %p3879_p4, %p3873_p2 }
  0xd1   : > { %3883 = shalt.err (!%p3880_p8)
}
  0xd2   : > { %s3884_s16 = scalar_lea.vmem %s4332_s19, 256  ;;  %s3991_s3 = smov [#allocation7]  }
  0xd3   : > { %p3885_p9 = scmp.ne.s32.totalorder %s4332_s19, %s3884_s16  ;;  %s3889_s9 = sshll.u32 %s3991_s3, 4  ;;  %s3890_s9 = int_to_ptr.vmem [resolvable:$false] %s3889_s9 }
  0xd4   : > { %s3891_s21 = scalar_lea.vmem %s3890_s9, 512  ;;  %p3892_p0 = scmp.lt.s32.totalorder %s4332_s19, %s3890_s9 }
  0xd5   : > { %p3887_p11 = pnand %p3885_p9, %p4806_p13  ;;  %p3893_p1 = scmp.lt.s32.totalorder %s3891_s21, %s3884_s16 }
  0xd7   : > { %p3888_p6 = pneg %p3887_p11  ;;  %p3894_p10 = por %p3893_p1, %p3892_p0 }
  0xd9   : > { %p3895_p3 = pnand %p3894_p10, %p3888_p6 }
  0xdb   : > { %3898 = shalt.err (!%p3895_p3)
}
  0xdc   : > { %3544 = dma.hbm_to_vmem [thread:$0]  (!%p4807_p5), %s4329_s7, 256, %s4332_s19, %s4211_s8, %s4809_s14, %s4809_s14, %s4808_s26  }
  0xdd   : > { %p4810_p13 = scmp.ne.s32.totalorder %s4788_s29, 0 }
  0xde   : > { %s4362_s13 = sand.u32 (!%p4810_p13), 1, %s3969_s22   ;;  %p4811_p2 = scmp.ne.s32.totalorder (!%p4810_p13), %s4785_s27, 0 }
  0xdf   : > { %476 = sbr.rel (%p4810_p13) target bundleno = 1995 (0x7cb), region = 68  ;;  %s4365_s30 = sshll.u32 (!%p4810_p13), %s4362_s13, 4 }
  0xe0   : > { %s479_s18 = scalar_lea.sflag (!%p4810_p13), [#allocation3], %s4362_s13  ;;  %s482_s6 = scalar_lea.vmem (!%p4810_p13), [#allocation2], %s4365_s30 }
  0xe6   : > { %3944 = dma.done.wait (%p4811_p2), %s479_s18, 256  }
  0xe7   : > { %3946 = vsyncadd (%p4811_p2), %s479_s18, 4294967040  ;;  %s487_s8 = sand.u32 1, %s4083_s25   ;;  %s491_s26 = scalar_lea.vmem [#allocation5], %s4365_s30 }
  0xe8   : > { %s488_s29 = scalar_lea.sflag [#allocation6], %s487_s8 }
  0xe9   : > { %3948 = dma.done.wait (%p4811_p2), %s488_s29, 512  }
  0xea   : > { %3950 = vsyncadd (%p4811_p2), %s488_s29, 4294966784  ;;  %s500_s14 = scalar_lea.vmem [#allocation7], %s4365_s30  ;;  %p4812_p5 = scmp.eq.s32.totalorder %s4083_s25, 0 }
  0xec   : > { %3952 = dma.done.wait (%p4812_p5), [#allocation9], 4656   ;;  %p4813_p7 = pmov %p4812_p5 }
  0xed   : > { %p4814_p12 = pmov %p4812_p5 }
  0xee   : > { %3954 = vsyncadd (%p4813_p7), [#allocation9], 4294962640 }
  0xef   : > { %3956 = dma.done.wait (%p4814_p12), [#allocation12], 7168   ;;  %p4815_p4 = pmov %p4812_p5 }
  0xf0   : > { %v3992_v0 = vmov 0.0   ;;  %vm3993_vm0 = vmmov 0   ;;  %v3605_v1 = vld [vmem:[#allocation10 + $0x20] sm:$0xff]   ;;  %v3606_v2 = vld [vmem:[#allocation10 + $0x28] sm:$0xff]   ;;  %v2923_v5 = vld [vmem:[#allocation8] ss:$0 sm:$0xff] }
  0xf1   : > { %3958 = vsyncadd (%p4815_p4), [#allocation12], 4294960128  ;;  %3206 = vmatprep.subr.bf16.mxu1 %v3992_v0  ;;  %3214 = vmatprep.mubr.msk.bf16.mxu1 %vm3993_vm0, %v3992_v0  ;;  %v4395_v3 = vld [vmem:[%s482_s6] sm:$0xff]  ;;  %v4397_v4 = vld [vmem:[%s482_s6 + $0x8] sm:$0xff]  ;;  %vm657_vm1 = vcmask 523264   ;;  %s4816_s19 = sld [smem:[#allocation31_spill]] }
  0xf2   : > { %3182 = vmatprep.subr.bf16.mxu0 %v3992_v0  ;;  %3190 = vmatprep.mubr.msk.bf16.mxu0 %vm3993_vm0, %v3992_v0  ;;  %v2924_v6 = vld [vmem:[%s4733_s4] ss:$0 sm:$0xff]  ;;  %v780_v7 = vmul.f32 %v2923_v5, %v4395_v3  ;;  %v781_v8 = vmul.f32 %v2923_v5, %v4397_v4  ;;  %v3607_v9 = vld [vmem:[#allocation10 + $0x30] sm:$0xff]   ;;  %v3609_v16 = vld [vmem:[#allocation10] sm:$0xff]   ;;  %s4817_s1 = sld [smem:[#allocation32_spill]]  ;;  %vm794_vm2 = vcmask 1040384  }
  0xf3   : > { %3207 = vmatpush3.bf16.msra.mxu1 %v3605_v1  ;;  %v3608_v12 = vld [vmem:[#allocation10 + $0x38] sm:$0xff]   ;;  %v3617_v17 = vld [vmem:[#allocation13 + $0x20] sm:$0xff]   ;;  %v3618_v18 = vld [vmem:[#allocation13 + $0x28] sm:$0xff]   ;;  %vm801_vm3 = vcmask 1046528   ;;  %s4818_s21 = sld [smem:[#allocation28_spill]]  ;;  %s4820_s29 = sld [smem:[#allocation29_spill]] }
  0xf4   : > { %3208 = vmatprep.subr.bf16.mxu1 %v3992_v0  ;;  %v788_v10 = vadd.f32 %v2924_v6, %v780_v7  ;;  %v789_v11 = vadd.f32 %v2924_v6, %v781_v8  ;;  %3183 = vmatpush3.bf16.msra.mxu0 %v3617_v17  ;;  %v3610_v19 = vld [vmem:[#allocation10 + $0x8] sm:$0xff]   ;;  %v3611_v26 = vld [vmem:[#allocation10 + $0x10] sm:$0xff]   ;;  %v3620_v33 = vld [vmem:[#allocation13 + $0x38] sm:$0xff]   ;;  %s4821_s24 = sld [smem:[#allocation24_spill]]  ;;  %s566_s20 = scalar_lea.vmem [#allocation14], %s4365_s30 }
  0xf5   : > { %3184 = vmatprep.subr.bf16.mxu0 %v3992_v0  ;;  %v599_v20 = vld [vmem:[%s500_s14] sm:$0xff]  ;;  %v600_v21 = vld [vmem:[%s500_s14 + $0x8] sm:$0xff]  ;;  %s2728_s12 = sshll.u32 %s566_s20, 4  ;;  %s3066_s17 = sshll.u32 %s4083_s25, 8  ;;  %s4678_s12 = int_to_ptr.vmem [resolvable:$true] %s2728_s12 }
  0xf6   : > { %v4405_v13 = vmax.f32 %v788_v10, 0.0  ;;  %v4407_v14 = vmax.f32 %v789_v11, 0.0  ;;  %v3619_v27 = vld [vmem:[#allocation13 + $0x30] sm:$0xff]   ;;  %v3612_v43 = vld [vmem:[#allocation10 + $0x18] sm:$0xff]   ;;  %v3621_v50 = vld [vmem:[#allocation13] sm:$0xff]   ;;  %s4822_s9 = sld [smem:[#allocation33_spill]] }
  0xf7   : > { %3209 = vmatpush3.bf16.msra.mxu1 %v3606_v2  ;;  %v2911_v22 = vld [vmem:[%s4816_s19 + $0x1] ss:$0 sm:$0xff]  ;;  %v569_v37 = vld [vmem:[%s491_s26 + $0x8] sm:$0xff]  ;;  %v2907_v38 = vld [vmem:[%s4816_s19] ss:$0 sm:$0xff]  ;;  %s2715_s30 = scalar_lea.sflag [#allocation4], %s4362_s13 }
  0xf8   : > { %3210 = vmatprep.subr.bf16.mxu1 %v3992_v0  ;;  %v817_v15 = vpack.c.bf16 %v4407_v14, %v4405_v13  ;;  %v2912_v23 = vld [vmem:[%s4817_s1 + $0x1] ss:$0 sm:$0xff]  ;;  %v611_v24 = vmul.f32 %v2911_v22, %v599_v20  ;;  %v612_v25 = vmul.f32 %v2911_v22, %v600_v21  ;;  %3185 = vmatpush3.bf16.msra.mxu0 %v3618_v18  ;;  %v796_v28 = vrot.slane %v4407_v14, 7  ;;  %v2908_v39 = vld [vmem:[%s4817_s1] ss:$0 sm:$0xff]  ;;  %v3613_v51 = vld [vmem:[#allocation10 + $0x40] sm:$0xff]  }
  0xf9   : > { %v795_v29 = vrot.slane %v4405_v13, 7  ;;  %3186 = vmatprep.subr.bf16.mxu0 %v3992_v0  ;;  %v803_v32 = vrot.slane %v4407_v14, 1  ;;  %v568_v36 = vld [vmem:[%s491_s26] sm:$0xff]  ;;  %v579_v41 = vmul.f32 %v2907_v38, %v569_v37  ;;  %v802_v42 = vrot.slane %v4405_v13, 1  ;;  %s4819_s18 = smov %s4818_s21  ;;  %s3899_s25 = scalar_lea.vmem %s4678_s12, 256 }
  0xfa   : > { %v619_v30 = vadd.f32 %v2912_v23, %v611_v24  ;;  %v620_v31 = vadd.f32 %v2912_v23, %v612_v25  ;;  %v578_v40 = vmul.f32 %v2907_v38, %v568_v36  ;;  %v3622_v55 = vld [vmem:[#allocation13 + $0x8] sm:$0xff]   ;;  %v3623_v57 = vld [vmem:[#allocation13 + $0x10] sm:$0xff]   ;;  %v3624_v59 = vld [vmem:[#allocation13 + $0x18] sm:$0xff]   ;;  %p3900_p8 = scmp.ne.s32.totalorder %s4678_s12, %s3899_s25  ;;  %p4823_p9 = scmp.ne.s32.totalorder %s4821_s24, 0 }
  0xfb   : > { %3211 = vmatpush3.bf16.msra.mxu1 %v3607_v9  ;;  %v797_v44 = vsel %vm794_vm2, %v795_v29, %v796_v28  ;;  %v800_v45 = vsel %vm794_vm2, 0.0, %v795_v29  ;;  %v587_v47 = vadd.f32 %v2908_v39, %v579_v41  ;;  %v807_v48 = vsel %vm801_vm3, %v803_v32, 0.0  ;;  %v3614_v56 = vld [vmem:[#allocation10 + $0x48] sm:$0xff]   ;;  %v3615_v58 = vld [vmem:[#allocation10 + $0x50] sm:$0xff]   ;;  %v3616_v60 = vld [vmem:[#allocation10 + $0x58] sm:$0xff]   ;;  %s3994_s6 = smov [#allocation14]  }
  0xfc   : > { %3212 = vmatprep.subr.bf16.mxu1 %v3992_v0  ;;  %v621_v34 = vmax.f32 %v619_v30, 0.0  ;;  %v622_v35 = vmax.f32 %v620_v31, 0.0  ;;  %3187 = vmatpush3.bf16.msra.mxu0 %v3619_v27  ;;  %v586_v46 = vadd.f32 %v2908_v39, %v578_v40  ;;  %v808_v54 = vpack.c.bf16 %v797_v44, %v800_v45  ;;  %v3625_v62 = vld [vmem:[#allocation11 + $0x20] sm:$0xff]   ;;  %v3626_v5 = vld [vmem:[#allocation11 + $0x28] sm:$0xff]   ;;  %v3628_v6 = vld [vmem:[#allocation11 + $0x30] sm:$0xff]   ;;  %p3901_p11 = pnand %p3900_p8, %p4823_p9  ;;  %s3903_s8 = sshll.u32 %s3994_s6, 4  ;;  %s3904_s8 = int_to_ptr.vmem [resolvable:$false] %s3903_s8 }
  0xfd   : > { %3188 = vmatprep.subr.bf16.mxu0 %v3992_v0  ;;  %v589_v53 = vmax.f32 %v587_v47, 0.0  ;;  %v804_v61 = vsel %vm801_vm3, %v802_v42, %v803_v32  ;;  %v3627_v1 = vld [vmem:[#allocation11 + $0x40] sm:$0xff]   ;;  %v3629_v7 = vld [vmem:[#allocation11 + $0x48] sm:$0xff]   ;;  %v3630_v8 = vld [vmem:[#allocation11 + $0x38] sm:$0xff]   ;;  %s3905_s26 = scalar_lea.vmem %s3904_s8, 512  ;;  %p3906_p0 = scmp.lt.s32.totalorder %s4678_s12, %s3904_s8 }
  0xfe   : > { %v623_v49 = vpack.c.bf16 %v622_v35, %v621_v34  ;;  %v588_v52 = vmax.f32 %v586_v46, 0.0  ;;  %v963_v2 = vpack.c.bf16 %v807_v48, %v804_v61  ;;  %v3631_v9 = vld [vmem:[#allocation11 + $0x50] sm:$0xff]   ;;  %v3633_v10 = vld [vmem:[#allocation11 + $0x58] sm:$0xff]   ;;  %v3632_v24 = vld [vmem:[#allocation11] sm:$0xff]   ;;  %p3902_p6 = pneg %p3901_p11  ;;  %p3907_p1 = scmp.lt.s32.totalorder %s3905_s26, %s3899_s25 }
  0xff   : > { %3213 = vmatpush3.bf16.msra.mxu1 %v3608_v12  ;;  %v2940_v11 = vld [vmem:[%s4818_s21] ss:$0 sm:$0xff]  ;;  %v3634_v34 = vld [vmem:[#allocation11 + $0x8] sm:$0xff]   ;;  %v3635_v36 = vld [vmem:[#allocation11 + $0x10] sm:$0xff]   ;;  %s4683_s21 = scalar_lea.hbm %s4822_s9, %s3066_s17 }
 0x100   : > { %3218 = vmatprep.subr.bf16.mxu1 %v3992_v0  ;;  %3189 = vmatpush3.bf16.msra.mxu0 %v3620_v33  ;;  %v590_v63 = vpack.c.bf16 %v589_v53, %v588_v52  ;;  %v2941_v13 = vld [vmem:[%s4820_s29] ss:$0 sm:$0xff]  ;;  %v3637_v38 = vld [vmem:[#allocation10 + $0x80] sm:$0xff]   ;;  %v3639_v40 = vld [vmem:[#allocation10 + $0x88] sm:$0xff]   ;;  %p3908_p10 = por %p3907_p1, %p3906_p0 }
 0x101   : > { %3194 = vmatprep.subr.bf16.mxu0 %v3992_v0  ;;  %v3636_v37 = vld [vmem:[#allocation11 + $0x18] sm:$0xff]   ;;  %v3638_v39 = vld [vmem:[#allocation13 + $0x40] sm:$0xff]   ;;  %v3640_v41 = vld [vmem:[#allocation13 + $0x48] sm:$0xff]  }
 0x102   : > { %3215 = vmatmul.mubr.msk.bf16.vlgmr.msra.gmra.mrb[0].mxu1 %vm657_vm1, %v817_v15  ;;  %v3641_v42 = vld [vmem:[#allocation10 + $0x90] sm:$0xff]   ;;  %v3643_v44 = vld [vmem:[#allocation10 + $0x98] sm:$0xff]   ;;  %p3909_p3 = pnand %p3908_p10, %p3902_p6 }
 0x103   : > { %3219 = vmatpush3.bf16.msra.mxu1 %v3609_v16  ;;  %3226 = vmatprep.mubr.msk.bf16.mxu1 %vm3993_vm0, %v3992_v0  ;;  %v3644_v45 = vld [vmem:[#allocation13 + $0x58] sm:$0xff]  }
 0x104   : > { %3220 = vmatprep.subr.bf16.mxu1 %v3992_v0  ;;  %3191 = vmatmul.mubr.msk.bf16.vlgmr.msra.gmra.mrb[0].mxu0 %vm657_vm1, %v623_v49  ;;  %v2959_v61 = vld [vmem:[%s4816_s19 + $0x2] ss:$0 sm:$0xff] }
 0x105   : > { %3195 = vmatpush3.bf16.msra.mxu0 %v3621_v50  ;;  %3202 = vmatprep.mubr.msk.bf16.mxu0 %vm3993_vm0, %v3992_v0 }
 0x106   : > { %3196 = vmatprep.subr.bf16.mxu0 %v3992_v0 }
 0x107   : > { %3221 = vmatpush3.bf16.msra.mxu1 %v3610_v19 }
 0x108   : > { %3222 = vmatprep.subr.bf16.mxu1 %v3992_v0 }
 0x109   : > { %3197 = vmatpush3.bf16.msra.mxu0 %v3622_v55 }
 0x10a   : > { %3198 = vmatprep.subr.bf16.mxu0 %v3992_v0 }
 0x10b   : > { %3223 = vmatpush3.bf16.msra.mxu1 %v3611_v26 }
 0x10c   : > { %3224 = vmatprep.subr.bf16.mxu1 %v3992_v0 }
 0x10d   : > { %3199 = vmatpush3.bf16.msra.mxu0 %v3623_v57 }
 0x10e   : > { %3200 = vmatprep.subr.bf16.mxu0 %v3992_v0 }
 0x10f   : > { %3225 = vmatpush3.bf16.msra.mxu1 %v3612_v43  ;;  %v3642_v43 = vld [vmem:[#allocation13 + $0x50] sm:$0xff]  }
 0x110   : > { %3230 = vmatprep.subr.bf16.mxu1 %v3992_v0 }
 0x111   : > { %3201 = vmatpush3.bf16.msra.mxu0 %v3624_v59 }
 0x112   : > { %3227 = vmatmul.mubr.msk.bf16.vlgmr.msra.gmra.mrb[0].mxu1 %vm657_vm1, %v808_v54  ;;  %3242 = vmatprep.subr.bf16.mxu0 %v3992_v0 }
 0x113   : > { %3231 = vmatpush3.bf16.msra.mxu1 %v3613_v51  ;;  %3238 = vmatprep.mubr.msk.bf16.mxu1 %vm3993_vm0, %v3992_v0 }
 0x114   : > { %3232 = vmatprep.subr.bf16.mxu1 %v3992_v0  ;;  %3203 = vmatmul.mubr.msk.bf16.vlgmr.msra.gmra.mrb[0].mxu0 %vm657_vm1, %v590_v63 }
 0x115   : > { %3243 = vmatpush3.bf16.msra.mxu0 %v3625_v62  ;;  %3250 = vmatprep.mubr.msk.bf16.mxu0 %vm3993_vm0, %v3992_v0  ;;  %v2967_v62 = vld [vmem:[#allocation8 + $0x1] ss:$0 sm:$0xff] }
 0x116   : > { %3244 = vmatprep.subr.bf16.mxu0 %v3992_v0 }
 0x117   : > { %3233 = vmatpush3.bf16.msra.mxu1 %v3614_v56 }
 0x118   : > { %3234 = vmatprep.subr.bf16.mxu1 %v3992_v0 }
 0x119   : > { %3245 = vmatpush3.bf16.msra.mxu0 %v3626_v5  ;;  %v2968_v5 = vld [vmem:[%s4733_s4 + $0x1] ss:$0 sm:$0xff] }
 0x11a   : > { %3246 = vmatprep.subr.bf16.mxu0 %v3992_v0 }
 0x11b   : > { %3235 = vmatpush3.bf16.msra.mxu1 %v3615_v58 }
 0x11c   : > { %3236 = vmatprep.subr.bf16.mxu1 %v3992_v0 }
 0x11d   : > { %3247 = vmatpush3.bf16.msra.mxu0 %v3628_v6 }
 0x11e   : > { %3248 = vmatprep.subr.bf16.mxu0 %v3992_v0 }
 0x11f   : > { %3237 = vmatpush3.bf16.msra.mxu1 %v3616_v60 }
 0x120   : > { %3266 = vmatprep.subr.bf16.mxu1 %v3992_v0 }
 0x121   : > { %3249 = vmatpush3.bf16.msra.mxu0 %v3630_v8 }
 0x122   : > { %3239 = vmatmul.mubr.msk.bf16.vlgmr.msra.gmra.mrb[0].mxu1 %vm657_vm1, %v963_v2  ;;  %3254 = vmatprep.subr.bf16.mxu0 %v3992_v0  ;;  %v2960_v2 = vld [vmem:[%s4817_s1 + $0x2] ss:$0 sm:$0xff] }
 0x123   : > { %3267 = vmatpush3.bf16.msra.mxu1 %v3627_v1  ;;  %3274 = vmatprep.mubr.msk.bf16.mxu1 %vm3993_vm0, %v3992_v0 }
 0x124   : > { %3268 = vmatprep.subr.bf16.mxu1 %v3992_v0 }
 0x127   : > { %3269 = vmatpush3.bf16.msra.mxu1 %v3629_v7 }
 0x128   : > { %3270 = vmatprep.subr.bf16.mxu1 %v3992_v0 }
 0x12b   : > { %3271 = vmatpush3.bf16.msra.mxu1 %v3631_v9 }
 0x12c   : > { %3272 = vmatprep.subr.bf16.mxu1 %v3992_v0 }
 0x12f   : > { %3273 = vmatpush3.bf16.msra.mxu1 %v3633_v10 }
 0x130   : > { %3290 = vmatprep.subr.bf16.mxu1 %v3992_v0 }
 0x1f5   : > { %v1034_v12 = vpop.f32.mrb[0].mxu1 }
 0x1f6   : > { %v1051_v14 = vmul.f32 %v2940_v11, %v1034_v12  ;;  %v3240_v15 = vpop.f32.mrb[1].mxu1 }
 0x1f7   : > { %v1037_v16 = vpop.f32.mrb[2].mxu1 }
 0x1f8   : > { %v1059_v17 = vadd.f32 %v2941_v13, %v1051_v14  ;;  %v1052_v18 = vmul.f32 %v2940_v11, %v1037_v16  ;;  %v3241_v19 = vpop.f32.mrb[3].mxu1 }
 0x1fa   : > { %v1061_v20 = vmax.f32 %v1059_v17, 0.0  ;;  %v1060_v21 = vadd.f32 %v2941_v13, %v1052_v18  ;;  %v3645_v18 = vld [vmem:[#allocation10 + $0x60] sm:$0xff]  }
 0x1fc   : > { %v1065_v22 = vrot.slane %v1061_v20, 7  ;;  %v1062_v23 = vmax.f32 %v1060_v21, 0.0  ;;  %v1071_v25 = vrot.slane %v1061_v20, 1  ;;  %v3653_v21 = vld [vmem:[#allocation11 + $0x80] sm:$0xff]  }
 0x1fe   : > { %v1066_v26 = vrot.slane %v1062_v23, 7  ;;  %v1072_v27 = vrot.slane %v1062_v23, 1  ;;  %v1086_v28 = vpack.c.bf16 %v1062_v23, %v1061_v20  ;;  %v1070_v29 = vsel %vm794_vm2, 0.0, %v1065_v22  ;;  %v3647_v23 = vld [vmem:[#allocation10 + $0x70] sm:$0xff]  }
 0x200   : > { %v1067_v30 = vsel %vm794_vm2, %v1065_v22, %v1066_v26  ;;  %v1073_v31 = vsel %vm801_vm3, %v1071_v25, %v1072_v27  ;;  %v1076_v32 = vsel %vm801_vm3, %v1072_v27, 0.0  ;;  %3251 = vmatmul.mubr.msk.bf16.vlgmr.msra.gmra.mrb[4].mxu0 %vm657_vm1, %v1086_v28  ;;  %v3654_v22 = vld [vmem:[#allocation11 + $0x88] sm:$0xff]   ;;  %v3648_v25 = vld [vmem:[#allocation10 + $0x78] sm:$0xff]  }
 0x201   : > { %v1232_v33 = vpack.c.bf16 %v1076_v32, %v1073_v31  ;;  %3255 = vmatpush3.bf16.msra.mxu0 %v3632_v24  ;;  %3262 = vmatprep.mubr.msk.bf16.mxu0 %vm3993_vm0, %v3992_v0  ;;  %v1077_v35 = vpack.c.bf16 %v1067_v30, %v1070_v29  ;;  %v3649_v29 = vld [vmem:[#allocation10 + $0xa0] sm:$0xff]   ;;  %v3650_v31 = vld [vmem:[#allocation10 + $0xa8] sm:$0xff]   ;;  %v3651_v32 = vld [vmem:[#allocation10 + $0xb0] sm:$0xff]  }
 0x202   : > { %3256 = vmatprep.subr.bf16.mxu0 %v3992_v0 }
 0x203   : > { %3275 = vmatmul.mubr.msk.bf16.vlgmr.msra.gmra.mrb[4].mxu1 %vm657_vm1, %v1232_v33 }
 0x204   : > { %3298 = vmatprep.mubr.msk.bf16.mxu1 %vm3993_vm0, %v3992_v0  ;;  %3291 = vmatpush3.bf16.msra.mxu1 %v3637_v38 }
 0x205   : > { %3257 = vmatpush3.bf16.msra.mxu0 %v3634_v34  ;;  %3292 = vmatprep.subr.bf16.mxu1 %v3992_v0 }
 0x206   : > { %3258 = vmatprep.subr.bf16.mxu0 %v3992_v0 }
 0x208   : > { %3293 = vmatpush3.bf16.msra.mxu1 %v3639_v40  ;;  %v3656_v40 = vld [vmem:[#allocation11 + $0x98] sm:$0xff]  }
 0x209   : > { %3259 = vmatpush3.bf16.msra.mxu0 %v3635_v36  ;;  %3294 = vmatprep.subr.bf16.mxu1 %v3992_v0 }
 0x20a   : > { %3260 = vmatprep.subr.bf16.mxu0 %v3992_v0 }
 0x20c   : > { %3295 = vmatpush3.bf16.msra.mxu1 %v3641_v42 }
 0x20d   : > { %3261 = vmatpush3.bf16.msra.mxu0 %v3636_v37  ;;  %3296 = vmatprep.subr.bf16.mxu1 %v3992_v0 }
 0x20e   : > { %3278 = vmatprep.subr.bf16.mxu0 %v3992_v0 }
 0x210   : > { %3263 = vmatmul.mubr.msk.bf16.vlgmr.msra.gmra.mrb[8].mxu0 %vm657_vm1, %v1077_v35  ;;  %3297 = vmatpush3.bf16.msra.mxu1 %v3643_v44  ;;  %v3652_v35 = vld [vmem:[#allocation10 + $0xb8] sm:$0xff]  }
 0x211   : > { %3286 = vmatprep.mubr.msk.bf16.mxu0 %vm3993_vm0, %v3992_v0  ;;  %3279 = vmatpush3.bf16.msra.mxu0 %v3638_v39  ;;  %v3655_v39 = vld [vmem:[#allocation11 + $0x90] sm:$0xff]  }
 0x212   : > { %3280 = vmatprep.subr.bf16.mxu0 %v3992_v0  ;;  %3302 = vmatprep.subr.bf16.mxu1 %v3992_v0 }
 0x215   : > { %3281 = vmatpush3.bf16.msra.mxu0 %v3640_v41  ;;  %v2986_v41 = vld [vmem:[%s4819_s18 + $0x1] ss:$0 sm:$0xff] }
 0x216   : > { %3282 = vmatprep.subr.bf16.mxu0 %v3992_v0 }
 0x219   : > { %3283 = vmatpush3.bf16.msra.mxu0 %v3642_v43  ;;  %v2987_v43 = vld [vmem:[%s4820_s29 + $0x1] ss:$0 sm:$0xff] }
 0x21a   : > { %3284 = vmatprep.subr.bf16.mxu0 %v3992_v0 }
 0x21d   : > { %3285 = vmatpush3.bf16.msra.mxu0 %v3644_v45 }
 0x21e   : > { %3326 = vmatprep.subr.bf16.mxu0 %v3992_v0 }
 0x2d3   : > { %v1157_v46 = vpop.f32.mrb[4].mxu0 }
 0x2d4   : > { %v3252_v47 = vpop.f32.mrb[5].mxu0 }
 0x2d5   : > { %v1160_v48 = vpop.f32.mrb[6].mxu0 }
 0x2d6   : > { %v3253_v49 = vpop.f32.mrb[7].mxu0  ;;  %v1303_v50 = vpop.f32.mrb[4].mxu1 }
 0x2d7   : > { %v3276_v51 = vpop.f32.mrb[5].mxu1 }
 0x2d8   : > { %v1306_v52 = vpop.f32.mrb[6].mxu1 }
 0x2d9   : > { %v3277_v53 = vpop.f32.mrb[7].mxu1 }
 0x2e3   : > { %v1225_v54 = vpop.f32.mrb[8].mxu0 }
 0x2e4   : > { %v1226_v55 = vadd.f32 %v1225_v54, %v1157_v46  ;;  %v3264_v56 = vpop.f32.mrb[9].mxu0  ;;  %v3657_v54 = vld [vmem:[#allocation11 + $0x60] sm:$0xff]  }
 0x2e5   : > { %v1228_v57 = vpop.f32.mrb[10].mxu0 }
 0x2e6   : > { %v1310_v58 = vadd.f32 %v1303_v50, %v1226_v55  ;;  %v1229_v59 = vadd.f32 %v1228_v57, %v1160_v48  ;;  %v3265_v60 = vpop.f32.mrb[11].mxu0 }
 0x2e8   : > { %v4515_v63 = vadd.f32 %v1310_v58, %v4395_v3  ;;  %v1311_v1 = vadd.f32 %v1306_v52, %v1229_v59 }
 0x2ea   : > { %v1324_v6 = vmul.f32 %v2959_v61, %v4515_v63  ;;  %v1426_v7 = vmul.f32 %v2967_v62, %v4515_v63  ;;  %v4526_v8 = vadd.f32 %v1311_v1, %v4397_v4  ;;  %v3646_v4 = vld [vmem:[#allocation10 + $0x68] sm:$0xff]  }
 0x2ec   : > { %v1332_v9 = vadd.f32 %v2960_v2, %v1324_v6  ;;  %v1434_v10 = vadd.f32 %v2968_v5, %v1426_v7  ;;  %v1325_v3 = vmul.f32 %v2959_v61, %v4526_v8  ;;  %v1427_v11 = vmul.f32 %v2967_v62, %v4526_v8  ;;  %v3659_v6 = vld [vmem:[#allocation11 + $0x70] sm:$0xff]   ;;  %v3660_v7 = vld [vmem:[#allocation11 + $0x78] sm:$0xff]  }
 0x2ee   : > { %v1333_v12 = vadd.f32 %v2960_v2, %v1325_v3  ;;  %v1435_v13 = vadd.f32 %v2968_v5, %v1427_v11  ;;  %v1334_v14 = vmax.f32 %v1332_v9, 0.0  ;;  %v1436_v15 = vmax.f32 %v1434_v10, 0.0  ;;  %v3658_v2 = vld [vmem:[#allocation11 + $0x68] sm:$0xff]   ;;  %v3661_v9 = vld [vmem:[#allocation11 + $0xa0] sm:$0xff]   ;;  %v3663_v3 = vld [vmem:[#allocation11 + $0xb0] sm:$0xff]  }
 0x2ef   : > { %v3662_v10 = vld [vmem:[#allocation11 + $0xa8] sm:$0xff]   ;;  %v3664_v11 = vld [vmem:[#allocation11 + $0xb8] sm:$0xff]  }
 0x2f0   : > { %v1335_v16 = vmax.f32 %v1333_v12, 0.0  ;;  %v1437_v17 = vmax.f32 %v1435_v13, 0.0  ;;  %v1440_v26 = vrot.slane %v1436_v15, 7  ;;  %v1446_v34 = vrot.slane %v1436_v15, 1  ;;  %v3665_v12 = vld [vmem:[#allocation10 + $0xe0] sm:$0xff]  }
 0x2f1   : > { %v3666_v13 = vld [vmem:[#allocation13 + $0x60] sm:$0xff]  }
 0x2f2   : > { %v1336_v19 = vpack.c.bf16 %v1335_v16, %v1334_v14  ;;  %v1462_v20 = vpack.c.bf16 %v1437_v17, %v1436_v15  ;;  %v1441_v24 = vrot.slane %v1437_v17, 7  ;;  %v1445_v28 = vsel %vm794_vm2, 0.0, %v1440_v26  ;;  %v3667_v14 = vld [vmem:[#allocation10 + $0xe8] sm:$0xff]   ;;  %v3669_v16 = vld [vmem:[#allocation10 + $0xf0] sm:$0xff]  }
 0x2f3   : > { %v1447_v33 = vrot.slane %v1437_v17, 1  ;;  %v3668_v15 = vld [vmem:[#allocation13 + $0x68] sm:$0xff]   ;;  %v3670_v17 = vld [vmem:[#allocation13 + $0x70] sm:$0xff]  }
 0x2f4   : > { %3287 = vmatmul.mubr.msk.bf16.vlgmr.msra.gmra.mrb[0].mxu0 %vm657_vm1, %v1336_v19  ;;  %3299 = vmatmul.mubr.msk.bf16.vlgmr.msra.gmra.mrb[8].mxu1 %vm657_vm1, %v1462_v20  ;;  %v1442_v27 = vsel %vm794_vm2, %v1440_v26, %v1441_v24  ;;  %v3672_v19 = vld [vmem:[#allocation13 + $0x78] sm:$0xff]  }
 0x2f5   : > { %3303 = vmatpush3.bf16.msra.mxu1 %v3645_v18  ;;  %3310 = vmatprep.mubr.msk.bf16.mxu1 %vm3993_vm0, %v3992_v0  ;;  %v1452_v30 = vpack.c.bf16 %v1442_v27, %v1445_v28  ;;  %v1448_v36 = vsel %vm801_vm3, %v1446_v34, %v1447_v33  ;;  %v1451_v37 = vsel %vm801_vm3, %v1447_v33, 0.0  ;;  %v3671_v18 = vld [vmem:[#allocation10 + $0xf8] sm:$0xff]  }
 0x2f6   : > { %3304 = vmatprep.subr.bf16.mxu1 %v3992_v0  ;;  %3327 = vmatpush3.bf16.msra.mxu0 %v3653_v21  ;;  %v1608_v38 = vpack.c.bf16 %v1451_v37, %v1448_v36  ;;  %v3013_v33 = vld [vmem:[#allocation8 + $0x2] ss:$0 sm:$0xff] }
 0x2f7   : > { %3328 = vmatprep.subr.bf16.mxu0 %v3992_v0  ;;  %3334 = vmatprep.mubr.msk.bf16.mxu0 %vm3993_vm0, %v3992_v0 }
 0x2f9   : > { %3305 = vmatpush3.bf16.msra.mxu1 %v3646_v4 }
 0x2fa   : > { %3306 = vmatprep.subr.bf16.mxu1 %v3992_v0  ;;  %3329 = vmatpush3.bf16.msra.mxu0 %v3654_v22 }
 0x2fb   : > { %3330 = vmatprep.subr.bf16.mxu0 %v3992_v0 }
 0x2fd   : > { %3307 = vmatpush3.bf16.msra.mxu1 %v3647_v23 }
 0x2fe   : > { %3308 = vmatprep.subr.bf16.mxu1 %v3992_v0  ;;  %3331 = vmatpush3.bf16.msra.mxu0 %v3655_v39  ;;  %v3014_v39 = vld [vmem:[%s4733_s4 + $0x2] ss:$0 sm:$0xff] }
 0x2ff   : > { %3332 = vmatprep.subr.bf16.mxu0 %v3992_v0 }
 0x301   : > { %3309 = vmatpush3.bf16.msra.mxu1 %v3648_v25 }
 0x302   : > { %3314 = vmatprep.subr.bf16.mxu1 %v3992_v0  ;;  %3333 = vmatpush3.bf16.msra.mxu0 %v3656_v40 }
 0x303   : > { %3338 = vmatprep.subr.bf16.mxu0 %v3992_v0 }
 0x304   : > { %3311 = vmatmul.mubr.msk.bf16.vlgmr.msra.gmra.mrb[8].mxu1 %vm657_vm1, %v1452_v30 }
 0x305   : > { %3315 = vmatpush3.bf16.msra.mxu1 %v3649_v29  ;;  %3322 = vmatprep.mubr.msk.bf16.mxu1 %vm3993_vm0, %v3992_v0 }
 0x306   : > { %3316 = vmatprep.subr.bf16.mxu1 %v3992_v0 }
 0x309   : > { %3317 = vmatpush3.bf16.msra.mxu1 %v3650_v31 }
 0x30a   : > { %3318 = vmatprep.subr.bf16.mxu1 %v3992_v0 }
 0x30d   : > { %3319 = vmatpush3.bf16.msra.mxu1 %v3651_v32  ;;  %v3005_v32 = vld [vmem:[%s4816_s19 + $0x3] ss:$0 sm:$0xff] }
 0x30e   : > { %3320 = vmatprep.subr.bf16.mxu1 %v3992_v0 }
 0x311   : > { %3321 = vmatpush3.bf16.msra.mxu1 %v3652_v35 }
 0x312   : > { %3374 = vmatprep.subr.bf16.mxu1 %v3992_v0 }
 0x314   : > { %3323 = vmatmul.mubr.msk.bf16.vlgmr.msra.gmra.mrb[8].mxu1 %vm657_vm1, %v1608_v38  ;;  %v3006_v38 = vld [vmem:[%s4817_s1 + $0x3] ss:$0 sm:$0xff] }
 0x315   : > { %3382 = vmatprep.mubr.msk.bf16.mxu1 %vm3993_vm0, %v3992_v0  ;;  %3375 = vmatpush3.bf16.msra.mxu1 %v3665_v12  ;;  %v3683_v12 = vld [vmem:[#allocation11 + $0x100] sm:$0xff]  }
 0x316   : > { %3376 = vmatprep.subr.bf16.mxu1 %v3992_v0 }
 0x319   : > { %3377 = vmatpush3.bf16.msra.mxu1 %v3667_v14  ;;  %v3684_v14 = vld [vmem:[#allocation11 + $0xf0] sm:$0xff]  }
 0x31a   : > { %3378 = vmatprep.subr.bf16.mxu1 %v3992_v0 }
 0x31d   : > { %3379 = vmatpush3.bf16.msra.mxu1 %v3669_v16  ;;  %v3686_v16 = vld [vmem:[#allocation11 + $0xf8] sm:$0xff]  }
 0x31e   : > { %3380 = vmatprep.subr.bf16.mxu1 %v3992_v0 }
 0x321   : > { %3381 = vmatpush3.bf16.msra.mxu1 %v3671_v18  ;;  %v3689_v18 = vld [vmem:[#allocation11 + $0x118] sm:$0xff]  }
 0x322   : > { %3386 = vmatprep.subr.bf16.mxu1 %v3992_v0 }
 0x3e7   : > { %v1679_v42 = vpop.f32.mrb[8].mxu1 }
 0x3e8   : > { %v1698_v44 = vmul.f32 %v2986_v41, %v1679_v42  ;;  %v3324_v45 = vpop.f32.mrb[9].mxu1 }
 0x3e9   : > { %v1682_v46 = vpop.f32.mrb[10].mxu1 }
 0x3ea   : > { %v1706_v47 = vadd.f32 %v2987_v43, %v1698_v44  ;;  %v1699_v48 = vmul.f32 %v2986_v41, %v1682_v46  ;;  %v3325_v49 = vpop.f32.mrb[11].mxu1 }
 0x3ec   : > { %v1708_v50 = vmax.f32 %v1706_v47, 0.0  ;;  %v1707_v51 = vadd.f32 %v2987_v43, %v1699_v48 }
 0x3ee   : > { %v1712_v52 = vrot.slane %v1708_v50, 7  ;;  %v1709_v53 = vmax.f32 %v1707_v51, 0.0  ;;  %v1718_v55 = vrot.slane %v1708_v50, 1 }
 0x3f0   : > { %v1713_v56 = vrot.slane %v1709_v53, 7  ;;  %v1719_v57 = vrot.slane %v1709_v53, 1  ;;  %v1734_v58 = vpack.c.bf16 %v1709_v53, %v1708_v50  ;;  %v1717_v59 = vsel %vm794_vm2, 0.0, %v1712_v52 }
 0x3f2   : > { %v1714_v60 = vsel %vm794_vm2, %v1712_v52, %v1713_v56  ;;  %v1720_v61 = vsel %vm801_vm3, %v1718_v55, %v1719_v57  ;;  %v1723_v62 = vsel %vm801_vm3, %v1719_v57, 0.0  ;;  %3335 = vmatmul.mubr.msk.bf16.vlgmr.msra.gmra.mrb[12].mxu0 %vm657_vm1, %v1734_v58  ;;  %v3673_v52 = vld [vmem:[#allocation10 + $0xc0] sm:$0xff]   ;;  %v3682_v56 = vld [vmem:[#allocation11 + $0xe8] sm:$0xff]   ;;  %v3675_v57 = vld [vmem:[#allocation10 + $0xd0] sm:$0xff]  }
 0x3f3   : > { %v1880_v1 = vpack.c.bf16 %v1723_v62, %v1720_v61  ;;  %3339 = vmatpush3.bf16.msra.mxu0 %v3657_v54  ;;  %3346 = vmatprep.mubr.msk.bf16.mxu0 %vm3993_vm0, %v3992_v0  ;;  %v1724_v5 = vpack.c.bf16 %v1714_v60, %v1717_v59  ;;  %v3681_v55 = vld [vmem:[#allocation11 + $0xe0] sm:$0xff]   ;;  %v3676_v60 = vld [vmem:[#allocation10 + $0xd8] sm:$0xff]  }
 0x3f4   : > { %3340 = vmatprep.subr.bf16.mxu0 %v3992_v0 }
 0x3f7   : > { %3341 = vmatpush3.bf16.msra.mxu0 %v3658_v2 }
 0x3f8   : > { %3342 = vmatprep.subr.bf16.mxu0 %v3992_v0 }
 0x3fb   : > { %3343 = vmatpush3.bf16.msra.mxu0 %v3659_v6  ;;  %v3679_v6 = vld [vmem:[#allocation10 + $0x110] sm:$0xff]  }
 0x3fc   : > { %3344 = vmatprep.subr.bf16.mxu0 %v3992_v0 }
 0x3ff   : > { %3345 = vmatpush3.bf16.msra.mxu0 %v3660_v7 }
 0x400   : > { %3350 = vmatprep.subr.bf16.mxu0 %v3992_v0 }
 0x402   : > { %3347 = vmatmul.mubr.msk.bf16.vlgmr.msra.gmra.mrb[16].mxu0 %vm657_vm1, %v1724_v5  ;;  %v3678_v5 = vld [vmem:[#allocation10 + $0x108] sm:$0xff]  }
 0x403   : > { %3351 = vmatpush3.bf16.msra.mxu0 %v3661_v9  ;;  %3358 = vmatprep.mubr.msk.bf16.mxu0 %vm3993_vm0, %v3992_v0 }
 0x404   : > { %3352 = vmatprep.subr.bf16.mxu0 %v3992_v0 }
 0x407   : > { %3353 = vmatpush3.bf16.msra.mxu0 %v3662_v10  ;;  %v3680_v10 = vld [vmem:[#allocation10 + $0x118] sm:$0xff]  }
 0x408   : > { %3354 = vmatprep.subr.bf16.mxu0 %v3992_v0 }
 0x40b   : > { %3355 = vmatpush3.bf16.msra.mxu0 %v3663_v3 }
 0x40c   : > { %3356 = vmatprep.subr.bf16.mxu0 %v3992_v0 }
 0x40f   : > { %3357 = vmatpush3.bf16.msra.mxu0 %v3664_v11 }
 0x410   : > { %3362 = vmatprep.subr.bf16.mxu0 %v3992_v0 }
 0x412   : > { %3359 = vmatmul.mubr.msk.bf16.vlgmr.msra.gmra.mrb[20].mxu0 %vm657_vm1, %v1880_v1  ;;  %v3677_v1 = vld [vmem:[#allocation10 + $0x100] sm:$0xff]  }
 0x413   : > { %3370 = vmatprep.mubr.msk.bf16.mxu0 %vm3993_vm0, %v3992_v0  ;;  %3363 = vmatpush3.bf16.msra.mxu0 %v3666_v13 }
 0x414   : > { %3364 = vmatprep.subr.bf16.mxu0 %v3992_v0 }
 0x417   : > { %3365 = vmatpush3.bf16.msra.mxu0 %v3668_v15  ;;  %v3685_v15 = vld [vmem:[#allocation11 + $0x108] sm:$0xff]  }
 0x418   : > { %3366 = vmatprep.subr.bf16.mxu0 %v3992_v0 }
 0x41b   : > { %3367 = vmatpush3.bf16.msra.mxu0 %v3670_v17  ;;  %v3687_v17 = vld [vmem:[#allocation11 + $0x110] sm:$0xff]  }
 0x41c   : > { %3368 = vmatprep.subr.bf16.mxu0 %v3992_v0 }
 0x41f   : > { %3369 = vmatpush3.bf16.msra.mxu0 %v3672_v19  ;;  %v3032_v19 = vld [vmem:[%s4819_s18 + $0x2] ss:$0 sm:$0xff] }
 0x420   : > { %3410 = vmatprep.subr.bf16.mxu0 %v3992_v0 }
 0x4c5   : > { %v1805_v20 = vpop.f32.mrb[12].mxu0 }
 0x4c6   : > { %v3336_v21 = vpop.f32.mrb[13].mxu0 }
 0x4c7   : > { %v1808_v4 = vpop.f32.mrb[14].mxu0  ;;  %v3033_v21 = vld [vmem:[%s4820_s29 + $0x2] ss:$0 sm:$0xff] }
 0x4c8   : > { %v3337_v22 = vpop.f32.mrb[15].mxu0 }
 0x4d5   : > { %v1873_v23 = vpop.f32.mrb[16].mxu0 }
 0x4d6   : > { %v1874_v24 = vadd.f32 %v1873_v23, %v1805_v20  ;;  %v3348_v25 = vpop.f32.mrb[17].mxu0 }
 0x4d7   : > { %v1876_v26 = vpop.f32.mrb[18].mxu0 }
 0x4d8   : > { %v1877_v27 = vadd.f32 %v1876_v26, %v1808_v4  ;;  %v3349_v28 = vpop.f32.mrb[19].mxu0 }
 0x4e5   : > { %v1951_v29 = vpop.f32.mrb[20].mxu0 }
 0x4e6   : > { %v1958_v30 = vadd.f32 %v1951_v29, %v1874_v24  ;;  %v3360_v31 = vpop.f32.mrb[21].mxu0 }
 0x4e7   : > { %v1954_v34 = vpop.f32.mrb[22].mxu0  ;;  %v3688_v31 = vld [vmem:[#allocation11 + $0xc0] sm:$0xff]  }
 0x4e8   : > { %v4597_v35 = vadd.f32 %v1958_v30, %v4515_v63  ;;  %v1959_v36 = vadd.f32 %v1954_v34, %v1877_v27  ;;  %v3361_v37 = vpop.f32.mrb[23].mxu0 }
 0x4ea   : > { %v1972_v40 = vmul.f32 %v3005_v32, %v4597_v35  ;;  %v2074_v41 = vmul.f32 %v3013_v33, %v4597_v35  ;;  %v4608_v42 = vadd.f32 %v1959_v36, %v4526_v8  ;;  %v3674_v8 = vld [vmem:[#allocation10 + $0xc8] sm:$0xff]  }
 0x4ec   : > { %v1980_v43 = vadd.f32 %v3006_v38, %v1972_v40  ;;  %v2082_v63 = vadd.f32 %v3014_v39, %v2074_v41  ;;  %v1973_v44 = vmul.f32 %v3005_v32, %v4608_v42  ;;  %v2075_v45 = vmul.f32 %v3013_v33, %v4608_v42 }
 0x4ee   : > { %v1981_v46 = vadd.f32 %v3006_v38, %v1973_v44  ;;  %v2083_v47 = vadd.f32 %v3014_v39, %v2075_v45  ;;  %v1982_v48 = vmax.f32 %v1980_v43, 0.0  ;;  %v2084_v49 = vmax.f32 %v2082_v63, 0.0  ;;  %v3690_v43 = vld [vmem:[#allocation11 + $0xc8] sm:$0xff]   ;;  %v3691_v44 = vld [vmem:[#allocation11 + $0xd0] sm:$0xff]   ;;  %v3692_v45 = vld [vmem:[#allocation11 + $0xd8] sm:$0xff]  }
 0x4f0   : > { %v1983_v50 = vmax.f32 %v1981_v46, 0.0  ;;  %v2085_v51 = vmax.f32 %v2083_v47, 0.0  ;;  %v2088_v59 = vrot.slane %v2084_v49, 7  ;;  %v2094_v9 = vrot.slane %v2084_v49, 1  ;;  %v3693_v46 = vld [vmem:[#allocation13 + $0x80] sm:$0xff]   ;;  %v3694_v47 = vld [vmem:[#allocation13 + $0x88] sm:$0xff]  }
 0x4f2   : > { %v1984_v53 = vpack.c.bf16 %v1983_v50, %v1982_v48  ;;  %v2110_v54 = vpack.c.bf16 %v2085_v51, %v2084_v49  ;;  %v2089_v58 = vrot.slane %v2085_v51, 7  ;;  %v2093_v62 = vsel %vm794_vm2, 0.0, %v2088_v59  ;;  %v3695_v48 = vld [vmem:[#allocation13 + $0x90] sm:$0xff]   ;;  %v3696_v49 = vld [vmem:[#allocation13 + $0x98] sm:$0xff]  }
 0x4f3   : > { %v2095_v7 = vrot.slane %v2085_v51, 1 }
 0x4f4   : > { %3371 = vmatmul.mubr.msk.bf16.vlgmr.msra.gmra.mrb[0].mxu0 %vm657_vm1, %v1984_v53  ;;  %3383 = vmatmul.mubr.msk.bf16.vlgmr.msra.gmra.mrb[12].mxu1 %vm657_vm1, %v2110_v54  ;;  %v2090_v61 = vsel %vm794_vm2, %v2088_v59, %v2089_v58 }
 0x4f5   : > { %3387 = vmatpush3.bf16.msra.mxu1 %v3673_v52  ;;  %3394 = vmatprep.mubr.msk.bf16.mxu1 %vm3993_vm0, %v3992_v0  ;;  %v2100_v2 = vpack.c.bf16 %v2090_v61, %v2093_v62  ;;  %v2096_v3 = vsel %vm801_vm3, %v2094_v9, %v2095_v7  ;;  %v2099_v11 = vsel %vm801_vm3, %v2095_v7, 0.0 }
 0x4f6   : > { %3388 = vmatprep.subr.bf16.mxu1 %v3992_v0  ;;  %3411 = vmatpush3.bf16.msra.mxu0 %v3681_v55  ;;  %v2256_v13 = vpack.c.bf16 %v2099_v11, %v2096_v3 }
 0x4f7   : > { %3412 = vmatprep.subr.bf16.mxu0 %v3992_v0  ;;  %3418 = vmatprep.mubr.msk.bf16.mxu0 %vm3993_vm0, %v3992_v0 }
 0x4f9   : > { %3389 = vmatpush3.bf16.msra.mxu1 %v3674_v8 }
 0x4fa   : > { %3390 = vmatprep.subr.bf16.mxu1 %v3992_v0  ;;  %3413 = vmatpush3.bf16.msra.mxu0 %v3682_v56 }
 0x4fb   : > { %3414 = vmatprep.subr.bf16.mxu0 %v3992_v0 }
 0x4fd   : > { %3391 = vmatpush3.bf16.msra.mxu1 %v3675_v57 }
 0x4fe   : > { %3392 = vmatprep.subr.bf16.mxu1 %v3992_v0  ;;  %3415 = vmatpush3.bf16.msra.mxu0 %v3684_v14 }
 0x4ff   : > { %3416 = vmatprep.subr.bf16.mxu0 %v3992_v0 }
 0x501   : > { %3393 = vmatpush3.bf16.msra.mxu1 %v3676_v60 }
 0x502   : > { %3398 = vmatprep.subr.bf16.mxu1 %v3992_v0  ;;  %3417 = vmatpush3.bf16.msra.mxu0 %v3686_v16 }
 0x503   : > { %3422 = vmatprep.subr.bf16.mxu0 %v3992_v0 }
 0x504   : > { %3395 = vmatmul.mubr.msk.bf16.vlgmr.msra.gmra.mrb[12].mxu1 %vm657_vm1, %v2100_v2 }
 0x505   : > { %3399 = vmatpush3.bf16.msra.mxu1 %v3677_v1  ;;  %3406 = vmatprep.mubr.msk.bf16.mxu1 %vm3993_vm0, %v3992_v0 }
 0x506   : > { %3400 = vmatprep.subr.bf16.mxu1 %v3992_v0 }
 0x509   : > { %3401 = vmatpush3.bf16.msra.mxu1 %v3678_v5 }
 0x50a   : > { %3402 = vmatprep.subr.bf16.mxu1 %v3992_v0 }
 0x50d   : > { %3403 = vmatpush3.bf16.msra.mxu1 %v3679_v6  ;;  %v3052_v6 = vld [vmem:[%s4817_s1 + $0x4] ss:$0 sm:$0xff] }
 0x50e   : > { %3404 = vmatprep.subr.bf16.mxu1 %v3992_v0 }
 0x511   : > { %3405 = vmatpush3.bf16.msra.mxu1 %v3680_v10 }
 0x512   : > { %3434 = vmatprep.subr.bf16.mxu1 %v3992_v0 }
 0x514   : > { %3407 = vmatmul.mubr.msk.bf16.vlgmr.msra.gmra.mrb[12].mxu1 %vm657_vm1, %v2256_v13 }
 0x515   : > { %3435 = vmatpush3.bf16.msra.mxu1 %v3683_v12  ;;  %3442 = vmatprep.mubr.msk.bf16.mxu1 %vm3993_vm0, %v3992_v0 }
 0x516   : > { %3436 = vmatprep.subr.bf16.mxu1 %v3992_v0 }
 0x519   : > { %3437 = vmatpush3.bf16.msra.mxu1 %v3685_v15 }
 0x51a   : > { %3438 = vmatprep.subr.bf16.mxu1 %v3992_v0 }
 0x51d   : > { %3439 = vmatpush3.bf16.msra.mxu1 %v3687_v17 }
 0x51e   : > { %3440 = vmatprep.subr.bf16.mxu1 %v3992_v0 }
 0x521   : > { %3441 = vmatpush3.bf16.msra.mxu1 %v3689_v18 }
 0x5e7   : > { %v2327_v20 = vpop.f32.mrb[12].mxu1 }
 0x5e8   : > { %v2346_v4 = vmul.f32 %v3032_v19, %v2327_v20  ;;  %v3408_v22 = vpop.f32.mrb[13].mxu1 }
 0x5e9   : > { %v2330_v23 = vpop.f32.mrb[14].mxu1 }
 0x5ea   : > { %v2354_v24 = vadd.f32 %v3033_v21, %v2346_v4  ;;  %v2347_v25 = vmul.f32 %v3032_v19, %v2330_v23  ;;  %v3409_v26 = vpop.f32.mrb[15].mxu1 }
 0x5ec   : > { %v2356_v27 = vmax.f32 %v2354_v24, 0.0  ;;  %v2355_v28 = vadd.f32 %v3033_v21, %v2347_v25 }
 0x5ee   : > { %v2360_v29 = vrot.slane %v2356_v27, 7  ;;  %v2357_v30 = vmax.f32 %v2355_v28, 0.0  ;;  %v2366_v32 = vrot.slane %v2356_v27, 1 }
 0x5f0   : > { %v2361_v33 = vrot.slane %v2357_v30, 7  ;;  %v2367_v34 = vrot.slane %v2357_v30, 1  ;;  %v2382_v36 = vpack.c.bf16 %v2357_v30, %v2356_v27  ;;  %v2365_v37 = vsel %vm794_vm2, 0.0, %v2360_v29 }
 0x5f2   : > { %v2362_v38 = vsel %vm794_vm2, %v2360_v29, %v2361_v33  ;;  %v2368_v39 = vsel %vm801_vm3, %v2366_v32, %v2367_v34  ;;  %v2371_v40 = vsel %vm801_vm3, %v2367_v34, 0.0  ;;  %3419 = vmatmul.mubr.msk.bf16.vlgmr.msra.gmra.mrb[24].mxu0 %vm657_vm1, %v2382_v36 }
 0x5f3   : > { %v2528_v41 = vpack.c.bf16 %v2371_v40, %v2368_v39  ;;  %3423 = vmatpush3.bf16.msra.mxu0 %v3688_v31  ;;  %3430 = vmatprep.mubr.msk.bf16.mxu0 %vm3993_vm0, %v3992_v0  ;;  %v2372_v63 = vpack.c.bf16 %v2362_v38, %v2365_v37 }
 0x5f4   : > { %3424 = vmatprep.subr.bf16.mxu0 %v3992_v0 }
 0x5f5   : > { %3443 = vmatmul.mubr.msk.bf16.vlgmr.msra.gmra.mrb[16].mxu1 %vm657_vm1, %v2528_v41 }
 0x5f7   : > { %3425 = vmatpush3.bf16.msra.mxu0 %v3690_v43 }
 0x5f8   : > { %3426 = vmatprep.subr.bf16.mxu0 %v3992_v0 }
 0x5fb   : > { %3427 = vmatpush3.bf16.msra.mxu0 %v3691_v44 }
 0x5fc   : > { %3428 = vmatprep.subr.bf16.mxu0 %v3992_v0 }
 0x5ff   : > { %3429 = vmatpush3.bf16.msra.mxu0 %v3692_v45 }
 0x600   : > { %3446 = vmatprep.subr.bf16.mxu0 %v3992_v0 }
 0x602   : > { %3431 = vmatmul.mubr.msk.bf16.vlgmr.msra.gmra.mrb[28].mxu0 %vm657_vm1, %v2372_v63 }
 0x603   : > { %3454 = vmatprep.mubr.msk.bf16.mxu0 %vm3993_vm0, %v3992_v0  ;;  %3447 = vmatpush3.bf16.msra.mxu0 %v3693_v46 }
 0x604   : > { %3448 = vmatprep.subr.bf16.mxu0 %v3992_v0 }
 0x607   : > { %3449 = vmatpush3.bf16.msra.mxu0 %v3694_v47 }
 0x608   : > { %3450 = vmatprep.subr.bf16.mxu0 %v3992_v0 }
 0x60b   : > { %3451 = vmatpush3.bf16.msra.mxu0 %v3695_v48 }
 0x60c   : > { %3452 = vmatprep.subr.bf16.mxu0 %v3992_v0  ;;  %v3051_v0 = vld [vmem:[%s4816_s19 + $0x4] ss:$0 sm:$0xff] }
 0x60f   : > { %3453 = vmatpush3.bf16.msra.mxu0 %v3696_v49 }
 0x6c5   : > { %v2453_v50 = vpop.f32.mrb[24].mxu0 }
 0x6c6   : > { %v3420_v51 = vpop.f32.mrb[25].mxu0 }
 0x6c7   : > { %v2456_v52 = vpop.f32.mrb[26].mxu0 }
 0x6c8   : > { %v3421_v53 = vpop.f32.mrb[27].mxu0  ;;  %v2599_v54 = vpop.f32.mrb[16].mxu1 }
 0x6c9   : > { %v3444_v55 = vpop.f32.mrb[17].mxu1 }
 0x6ca   : > { %v2602_v8 = vpop.f32.mrb[18].mxu1 }
 0x6cb   : > { %v3445_v56 = vpop.f32.mrb[19].mxu1 }
 0x6d5   : > { %v2521_v57 = vpop.f32.mrb[28].mxu0 }
 0x6d6   : > { %v2522_v58 = vadd.f32 %v2521_v57, %v2453_v50  ;;  %v3432_v59 = vpop.f32.mrb[29].mxu0 }
 0x6d7   : > { %v2524_v60 = vpop.f32.mrb[30].mxu0 }
 0x6d8   : > { %v2606_v61 = vadd.f32 %v2599_v54, %v2522_v58  ;;  %v2525_v62 = vadd.f32 %v2524_v60, %v2456_v52  ;;  %v3433_v1 = vpop.f32.mrb[31].mxu0 }
 0x6da   : > { %v2608_v2 = vadd.f32 %v2606_v61, %v4597_v35  ;;  %v2607_v5 = vadd.f32 %v2602_v8, %v2525_v62 }
 0x6dc   : > { %v2620_v7 = vmul.f32 %v3051_v0, %v2608_v2  ;;  %v2609_v9 = vadd.f32 %v2607_v5, %v4608_v42 }
 0x6de   : > { %v2628_v10 = vadd.f32 %v3052_v6, %v2620_v7  ;;  %v2621_v3 = vmul.f32 %v3051_v0, %v2609_v9 }
 0x6e0   : > { %v2629_v11 = vadd.f32 %v3052_v6, %v2621_v3  ;;  %v2630_v12 = vmax.f32 %v2628_v10, 0.0 }
 0x6e2   : > { %v2631_v13 = vmax.f32 %v2629_v11, 0.0 }
 0x6e4   : > { %v2632_v14 = vpack.c.bf16 %v2631_v13, %v2630_v12 }
 0x6e6   : > { %3455 = vmatmul.mubr.msk.bf16.vlgmr.msra.gmra.mrb[0].mxu0 %vm657_vm1, %v2632_v14 }
 0x7b9   : > { %v2703_v35 = vpop.f32.mrb[0].mxu0 }
 0x7ba   : > { %2712 = vst.msk [vmem:[%s566_s20] sm:$0xff] %vm657_vm1, %v2703_v35  ;;  %v3456_v42 = vpop.f32.mrb[1].mxu0 }
 0x7bb   : > { %v2706_v15 = vpop.f32.mrb[2].mxu0 }
 0x7bc   : > { %2713 = vst.msk [vmem:[%s566_s20 + $0x8] sm:$0xff] %vm657_vm1, %v2706_v15  ;;  %v3457_v16 = vpop.f32.mrb[3].mxu0 }
 0x7bd   : > { %3912 = shalt.err (!%p3909_p3)
}
 0x7be   : > { %s3913_s14 = scalar_lea.hbm %s4683_s21, 256  ;;  %s3917_s7 = scalar_lea.hbm %s4822_s9, 512 }
 0x7bf   : > { %p3914_p13 = scmp.ne.s32.totalorder %s4683_s21, %s3913_s14  ;;  %p3918_p7 = scmp.lt.u32.totalorder %s4683_s21, %s4822_s9 }
 0x7c0   : > { %p3919_p12 = scmp.lt.u32.totalorder %s3917_s7, %s3913_s14  ;;  %p3921_p8 = scmp.lt.u32.totalorder %s3913_s14, %s4683_s21 }
 0x7c1   : > { %p3915_p2 = pnand %p3914_p13, %p4823_p9 }
 0x7c2   : > { %p3920_p4 = por %p3919_p12, %p3918_p7 }
 0x7c3   : > { %p3916_p5 = pneg %p3915_p2 }
 0x7c4   : > { %p3922_p11 = por %p3921_p8, %p3920_p4 }
 0x7c6   : > { %p3923_p6 = pnand %p3922_p11, %p3916_p5 }
 0x7c8   : > { %3926 = shalt.err (!%p3923_p6)
}
 0x7c9   : > { %s3995_s20 = smov 128   ;;  %s3996_s17 = smov 8  }
 0x7ca   : > { %3520 = dma.vmem_to_hbm [thread:$0]  (%p4823_p9), %s4678_s12, 256, %s4683_s21, %s2715_s30, %s3995_s20, %s3995_s20, %s3996_s17  }
 0x7cb PF: > { %s4824_s16 = sld [smem:[#allocation20_spill]]  ;;  %s4825_s3 = sld [smem:[#allocation22_spill]] }
 0x7cc   : > { %s4826_s25 = sld [smem:[#allocation21_spill]] }
 0x7d1   : > { %s2743_s6 = sand.u32 1, %s4824_s16   ;;  %p4827_p0 = scmp.ne.s32.totalorder %s4825_s3, 0 }
 0x7d2   : > { %p4828_p1 = scmp.ge.s32.totalorder %s4826_s25, 2  ;;  %s2744_s8 = scalar_lea.sflag [#allocation4], %s2743_s6 }
 0x7d4   : > { %p3546_p10 = pnand %p4828_p1, %p4827_p0 }
 0x7d6   : > { %3960 = dma.done.wait (!%p3546_p10), %s2744_s8, 256  }
 0x7d7   : > { %3962 = vsyncadd (!%p3546_p10), %s2744_s8, 4294967040  ;;  %s4829_s24 = sld [smem:[#allocation23_spill]]  ;;  %s4830_s26 = sld [smem:[#allocation25_spill]] }
 0x7d8   : > { %s4831_s21 = smov %s3969_s22  ;;  %s4832_s22 = smov %s3973_s23 }
 0x7dd   : > { %p30_p3 = scmp.ge.s32.totalorder %s4829_s24, 4   ;;  %s4833_s23 = smov %s4830_s26 }
 0x7df   :  { %32 = sbr.rel (!%p30_p3) target bundleno = 18 (0x12), region = 189 }
 0x7e6   :  { %2749 = vsyncpa [#allocation3], 1 }
 0x7e7   :  { %2751 = vsyncpa [#allocation3 + $0x1], 1 }
 0x7e8   :  { %2752 = vsyncpa [#allocation6], 1 }
 0x7e9   :  { %2754 = vsyncpa [#allocation6 + $0x1], 1 }
 0x7ea   :  { %2755 = vsyncpa [#allocation9], 1 }
 0x7eb   :  { %2756 = vsyncpa [#allocation12], 1 }
 0x7ec   :  { %2757 = vsyncpa [#allocation4], 1 }
 0x7ed   :  { %2759 = vsyncpa [#allocation4 + $0x1], 1 }

</bundles_post_ra>
